<compile_context>
chip_gen: v5e
topology: v5e:2x2
jax: 0.10.0
libtpu: 0.0.40
codegen_flags: <defaults>
</compile_context>

<pallas_src>
import functools
import math

import jax
import jax.numpy as jnp
from jax.experimental import pallas as pl
from jax.experimental.pallas import tpu as pltpu


# ----------------------------------------------------------------------------
# tiling helper
# ----------------------------------------------------------------------------
def _tile(dim: int, target: int, align: int) -> int:
    """Largest tile <= target that is a multiple of `align` and divides `dim`;
    falls back to the full dim (full-extent blocks are always legal)."""
    if dim <= target:
        return dim
    t = (target // align) * align
    while t >= align:
        if dim % t == 0:
            return t
        t -= align
    return dim


# ----------------------------------------------------------------------------
# fused matmul + bias (+ optional ReLU):  Y = act(X @ W + b)
# ----------------------------------------------------------------------------
def _matmul_bias_kernel(x_ref, w_ref, b_ref, o_ref, acc_ref, *, activation):
    k = pl.program_id(2)

    @pl.when(k == 0)
    def _():
        acc_ref[...] = jnp.zeros_like(acc_ref)

    acc_ref[...] += jnp.dot(x_ref[...], w_ref[...],
                            preferred_element_type=jnp.float32)

    @pl.when(k == pl.num_programs(2) - 1)
    def _():
        y = acc_ref[...] + b_ref[...].astype(jnp.float32)
        if activation == "relu":
            y = jnp.maximum(y, 0.0)
        o_ref[...] = y.astype(o_ref.dtype)


def linear(x, w, b, activation=None):
    """x: (M, K), w: (K, N), b: (N,)  ->  (M, N)."""
    M, K = x.shape
    Kw, N = w.shape
    assert K == Kw
    tm = _tile(M, 256, 8)
    tn = _tile(N, 256, 128)
    tk = _tile(K, 512, 128)
    b2 = b.reshape(1, N)
    return pl.pallas_call(
        functools.partial(_matmul_bias_kernel, activation=activation),
        out_shape=jax.ShapeDtypeStruct((M, N), x.dtype),
        grid=(M // tm, N // tn, K // tk),
        in_specs=[
            pl.BlockSpec((tm, tk), lambda i, j, k: (i, k)),
            pl.BlockSpec((tk, tn), lambda i, j, k: (k, j)),
            pl.BlockSpec((1, tn), lambda i, j, k: (0, j)),
        ],
        out_specs=pl.BlockSpec((tm, tn), lambda i, j, k: (i, j)),
        scratch_shapes=[pltpu.VMEM((tm, tn), jnp.float32)],
        compiler_params=pltpu.CompilerParams(
            dimension_semantics=("parallel", "parallel", "arbitrary")),
    )(x, w, b2)


# ----------------------------------------------------------------------------
# scaled dot-product attention, one (batch, head) slice per grid step
# ----------------------------------------------------------------------------
def _attention_kernel(q_ref, k_ref, v_ref, o_ref, *, scale):
    q = q_ref[...].astype(jnp.float32)
    k = k_ref[...].astype(jnp.float32)
    v = v_ref[...].astype(jnp.float32)
    s = jnp.dot(q, k.T, preferred_element_type=jnp.float32) * scale
    m = jnp.max(s, axis=-1, keepdims=True)
    p = jnp.exp(s - m)
    p = p / jnp.sum(p, axis=-1, keepdims=True)
    o_ref[...] = jnp.dot(p, v, preferred_element_type=jnp.float32).astype(o_ref.dtype)


def scaled_dot_attention(q, k, v):
    """q, k, v: (B*H, S, depth)  ->  (B*H, S, depth)."""
    BH, S, depth = q.shape
    scale = 1.0 / math.sqrt(depth)

    def spec():
        return pl.BlockSpec((None, S, depth), lambda i: (i, 0, 0))

    return pl.pallas_call(
        functools.partial(_attention_kernel, scale=scale),
        out_shape=jax.ShapeDtypeStruct((BH, S, depth), q.dtype),
        grid=(BH,),
        in_specs=[spec(), spec(), spec()],
        out_specs=spec(),
        compiler_params=pltpu.CompilerParams(dimension_semantics=("parallel",)),
    )(q, k, v)


# ----------------------------------------------------------------------------
# fused residual-add + LayerNorm over lane-dense (B*S, D) rows
# ----------------------------------------------------------------------------
def _add_layernorm_kernel(x_ref, y_ref, g_ref, b_ref, o_ref, *, eps):
    z = x_ref[...].astype(jnp.float32) + y_ref[...].astype(jnp.float32)
    mean = jnp.mean(z, axis=-1, keepdims=True)
    cz = z - mean
    var = jnp.mean(cz * cz, axis=-1, keepdims=True)
    zn = cz * jax.lax.rsqrt(var + eps)
    o_ref[...] = (zn * g_ref[...].astype(jnp.float32)
                  + b_ref[...].astype(jnp.float32)).astype(o_ref.dtype)


def add_layernorm(x, y, gamma, beta, eps=1e-5):
    """layernorm(x + y) over the last dim.  x, y: (M, D)."""
    M, D = x.shape
    tr = _tile(M, 1024, 8)
    g2 = gamma.reshape(1, D)
    b2 = beta.reshape(1, D)
    return pl.pallas_call(
        functools.partial(_add_layernorm_kernel, eps=eps),
        out_shape=jax.ShapeDtypeStruct((M, D), x.dtype),
        grid=(M // tr,),
        in_specs=[
            pl.BlockSpec((tr, D), lambda i: (i, 0)),
            pl.BlockSpec((tr, D), lambda i: (i, 0)),
            pl.BlockSpec((1, D), lambda i: (0, 0)),
            pl.BlockSpec((1, D), lambda i: (0, 0)),
        ],
        out_specs=pl.BlockSpec((tr, D), lambda i: (i, 0)),
        compiler_params=pltpu.CompilerParams(dimension_semantics=("parallel",)),
    )(x, y, g2, b2)


# ----------------------------------------------------------------------------
# encoder layer / encoder stack (glue: reshapes + kernel calls)
# ----------------------------------------------------------------------------
def encoder_layer(x2d, p, B, S, num_heads):
    N, D = x2d.shape
    depth = D // num_heads

    # --- multi-head attention: fused QKV projection (one matmul, not three) ---
    qkv = linear(x2d, p["w_qkv"], p["b_qkv"])                      # (N, 3D)
    q, k, v = jnp.split(qkv, 3, axis=-1)

    def split_heads(t):
        return (t.reshape(B, S, num_heads, depth)
                 .transpose(0, 2, 1, 3)
                 .reshape(B * num_heads, S, depth))

    attn = scaled_dot_attention(split_heads(q), split_heads(k), split_heads(v))
    attn = (attn.reshape(B, num_heads, S, depth)
                .transpose(0, 2, 1, 3)
                .reshape(N, D))
    attn_out = linear(attn, p["w_o"], p["b_o"])                    # (N, D)

    # TODO(synk): nn.Dropout layers are inference-mode identity (no RNG dropout).
    x1 = add_layernorm(x2d, attn_out, p["ln1_g"], p["ln1_b"])

    # --- feed-forward: ReLU fused into the first matmul's epilogue ---
    h = linear(x1, p["w_ff1"], p["b_ff1"], activation="relu")      # (N, d_ff)
    ffn_out = linear(h, p["w_ff2"], p["b_ff2"])                    # (N, D)
    return add_layernorm(x1, ffn_out, p["ln2_g"], p["ln2_b"])


@functools.partial(jax.jit, static_argnums=2)
def transformer_encoder(x, layer_params, num_heads):
    B, S, D = x.shape
    x2d = x.reshape(B * S, D)            # lane-dense row layout for all kernels
    for p in layer_params:
        x2d = encoder_layer(x2d, p, B, S, num_heads)
    return x2d.reshape(B, S, D)


# ----------------------------------------------------------------------------
# deterministic parameters + pure-JAX reference
# ----------------------------------------------------------------------------
def init_layer_params(key, d_model, num_heads, d_ff):
    ks = jax.random.split(key, 10)
    sd = 1.0 / math.sqrt(d_model)
    sf = 1.0 / math.sqrt(d_ff)
    wq = jax.random.normal(ks[0], (d_model, d_model), jnp.float32) * sd
    wk = jax.random.normal(ks[1], (d_model, d_model), jnp.float32) * sd
    wv = jax.random.normal(ks[2], (d_model, d_model), jnp.float32) * sd
    return {
        "w_qkv": jnp.concatenate([wq, wk, wv], axis=1),            # (D, 3D)
        "b_qkv": jax.random.normal(ks[3], (3 * d_model,), jnp.float32) * 0.02,
        "w_o":   jax.random.normal(ks[4], (d_model, d_model), jnp.float32) * sd,
        "b_o":   jax.random.normal(ks[5], (d_model,), jnp.float32) * 0.02,
        "w_ff1": jax.random.normal(ks[6], (d_model, d_ff), jnp.float32) * sd,
        "b_ff1": jax.random.normal(ks[7], (d_ff,), jnp.float32) * 0.02,
        "w_ff2": jax.random.normal(ks[8], (d_ff, d_model), jnp.float32) * sf,
        "b_ff2": jax.random.normal(ks[9], (d_model,), jnp.float32) * 0.02,
        "ln1_g": jnp.ones((d_model,), jnp.float32),
        "ln1_b": jnp.zeros((d_model,), jnp.float32),
        "ln2_g": jnp.ones((d_model,), jnp.float32),
        "ln2_b": jnp.zeros((d_model,), jnp.float32),
    }


def reference_forward(x, layer_params, num_heads):
    B, S, D = x.shape
    depth = D // num_heads

    def layernorm(z, g, b, eps=1e-5):
        mean = jnp.mean(z, axis=-1, keepdims=True)
        var = jnp.mean((z - mean) ** 2, axis=-1, keepdims=True)
        return (z - mean) / jnp.sqrt(var + eps) * g + b

    for p in layer_params:
        qkv = x @ p["w_qkv"] + p["b_qkv"]
        q, k, v = jnp.split(qkv, 3, axis=-1)

        def sh(t):
            return t.reshape(B, S, num_heads, depth).transpose(0, 2, 1, 3)

        q, k, v = sh(q), sh(k), sh(v)
        logits = jnp.einsum("bhqd,bhkd->bhqk", q, k) / math.sqrt(depth)
        w = jax.nn.softmax(logits, axis=-1)
        attn = jnp.einsum("bhqk,bhkd->bhqd", w, v)
        attn = attn.transpose(0, 2, 1, 3).reshape(B, S, D)
        attn_out = attn @ p["w_o"] + p["b_o"]
        x = layernorm(x + attn_out, p["ln1_g"], p["ln1_b"])
        h = jnp.maximum(x @ p["w_ff1"] + p["b_ff1"], 0.0)
        ffn_out = h @ p["w_ff2"] + p["b_ff2"]
        x = layernorm(x + ffn_out, p["ln2_g"], p["ln2_b"])
    return x


if __name__ == "__main__":
    B, S, D = 2, 8, 32
    num_heads, d_ff, num_layers = 4, 64, 2

    key = jax.random.PRNGKey(0)
    key_x, key_p = jax.random.split(key)
    x = jax.random.normal(key_x, (B, S, D), dtype=jnp.float32)

    layer_keys = jax.random.split(key_p, num_layers)
    layer_params = [init_layer_params(k, D, num_heads, d_ff) for k in layer_keys]

    out = transformer_encoder(x, layer_params, num_heads)
    out = jax.block_until_ready(out)

    ref = reference_forward(x, layer_params, num_heads)
    assert out.shape == (B, S, D)
    err = float(jnp.max(jnp.abs(out - ref)))
    assert jnp.allclose(out, ref, atol=2e-3, rtol=2e-3), f"mismatch vs reference (max err {err})"

    print("KERNEL_OK")
</pallas_src>

<mosaic_0001>
module attributes {stable_mosaic.version = 11 : i64} {
  func.func @_matmul_bias_kernel(%arg0: i32, %arg1: i32, %arg2: i32, %arg3: memref<16x32xf32, #tpu.memory_space<vmem>>, %arg4: memref<32x96xf32, #tpu.memory_space<vmem>>, %arg5: memref<1x96xf32, #tpu.memory_space<vmem>>, %arg6: memref<16x96xf32, #tpu.memory_space<vmem>>, %arg7: memref<16x96xf32, #tpu.memory_space<vmem>>) attributes {dimension_semantics = [#tpu.dimension_semantics<parallel>, #tpu.dimension_semantics<parallel>, #tpu.dimension_semantics<arbitrary>], iteration_bounds = array<i64: 1, 1, 1>, scalar_prefetch = 0 : i64, scratch_operands = 1 : i64, tpu.core_type = #tpu.core_type<tc>, window_params = [{transform_indices = @transform_0, window_bounds = array<i64: 16, 32>}, {transform_indices = @transform_1, window_bounds = array<i64: 32, 96>}, {transform_indices = @transform_2, window_bounds = array<i64: 1, 96>}, {transform_indices = @transform_3, window_bounds = array<i64: 16, 96>}]} {
    %c0_i32 = arith.constant 0 : i32
    %0 = arith.cmpi eq, %arg2, %c0_i32 : i32
    %1 = arith.extui %0 : i1 to i32
    %c0_i32_0 = arith.constant 0 : i32
    %2 = arith.cmpi ne, %1, %c0_i32_0 : i32
    scf.if %2 {
      %cst_10 = arith.constant 0.000000e+00 : f32
      %12 = vector.broadcast %cst_10 : f32 to vector<16x96xf32>
      %c0_11 = arith.constant 0 : index
      %c0_12 = arith.constant 0 : index
      %13 = vector.load %arg7[%c0_11, %c0_12] : memref<16x96xf32, #tpu.memory_space<vmem>>, vector<16x96xf32>
      tpu.vector_store %arg7[%c0_11, %c0_12], %12 {strides = array<i32>} : memref<16x96xf32, #tpu.memory_space<vmem>>, vector<16x96xf32>,
    } else {
    }
    %c0 = arith.constant 0 : index
    %c0_1 = arith.constant 0 : index
    %3 = vector.load %arg7[%c0, %c0_1] : memref<16x96xf32, #tpu.memory_space<vmem>>, vector<16x96xf32>
    %c0_2 = arith.constant 0 : index
    %c0_3 = arith.constant 0 : index
    %4 = vector.load %arg3[%c0_2, %c0_3] : memref<16x32xf32, #tpu.memory_space<vmem>>, vector<16x32xf32>
    %c0_4 = arith.constant 0 : index
    %c0_5 = arith.constant 0 : index
    %5 = vector.load %arg4[%c0_4, %c0_5] : memref<32x96xf32, #tpu.memory_space<vmem>>, vector<32x96xf32>
    %cst = arith.constant dense<0.000000e+00> : vector<16x96xf32>
    %6 = tpu.matmul %4, %5, %cst {dimension_numbers = #tpu.dot_dimension_numbers<[1], [0], [0], [1], [0, 0, 1, 1], [], []>} : vector<16x32xf32>, vector<32x96xf32>, vector<16x96xf32> -> vector<16x96xf32>
    %7 = arith.addf %3, %6 : vector<16x96xf32>
    %c0_6 = arith.constant 0 : index
    %c0_7 = arith.constant 0 : index
    %8 = vector.load %arg7[%c0_6, %c0_7] : memref<16x96xf32, #tpu.memory_space<vmem>>, vector<16x96xf32>
    tpu.vector_store %arg7[%c0_6, %c0_7], %7 {strides = array<i32>} : memref<16x96xf32, #tpu.memory_space<vmem>>, vector<16x96xf32>,
    %c0_i32_8 = arith.constant 0 : i32
    %9 = arith.cmpi eq, %arg2, %c0_i32_8 : i32
    %10 = arith.extui %9 : i1 to i32
    %c0_i32_9 = arith.constant 0 : i32
    %11 = arith.cmpi ne, %10, %c0_i32_9 : i32
    scf.if %11 {
      %c0_10 = arith.constant 0 : index
      %c0_11 = arith.constant 0 : index
      %12 = vector.load %arg7[%c0_10, %c0_11] : memref<16x96xf32, #tpu.memory_space<vmem>>, vector<16x96xf32>
      %c0_12 = arith.constant 0 : index
      %c0_13 = arith.constant 0 : index
      %13 = vector.load %arg5[%c0_12, %c0_13] : memref<1x96xf32, #tpu.memory_space<vmem>>, vector<1x96xf32>
      %14 = vector.broadcast %13 : vector<1x96xf32> to vector<16x96xf32>
      %15 = arith.addf %12, %14 : vector<16x96xf32>
      %c0_14 = arith.constant 0 : index
      %c0_15 = arith.constant 0 : index
      %16 = vector.load %arg6[%c0_14, %c0_15] : memref<16x96xf32, #tpu.memory_space<vmem>>, vector<16x96xf32>
      tpu.vector_store %arg6[%c0_14, %c0_15], %15 {strides = array<i32>} : memref<16x96xf32, #tpu.memory_space<vmem>>, vector<16x96xf32>,
    } else {
    }
    return
  }
  func.func @transform_0(%arg0: i32, %arg1: i32, %arg2: i32) -> (i32, i32) {
    %c0_i32 = arith.constant 0 : i32
    return %arg0, %arg2 : i32, i32
  }
  func.func @transform_1(%arg0: i32, %arg1: i32, %arg2: i32) -> (i32, i32) {
    %c0_i32 = arith.constant 0 : i32
    return %arg2, %arg1 : i32, i32
  }
  func.func @transform_2(%arg0: i32, %arg1: i32, %arg2: i32) -> (i32, i32) {
    %c0_i32 = arith.constant 0 : i32
    %c0_i32_0 = arith.constant 0 : i32
    return %c0_i32, %arg1 : i32, i32
  }
  func.func @transform_3(%arg0: i32, %arg1: i32, %arg2: i32) -> (i32, i32) {
    %c0_i32 = arith.constant 0 : i32
    return %arg0, %arg1 : i32, i32
  }
}

module attributes {stable_mosaic.version = 11 : i64} {
  func.func @_attention_kernel(%arg0: i32, %arg1: memref<1x8x8xf32, #tpu.memory_space<vmem>>, %arg2: memref<1x8x8xf32, #tpu.memory_space<vmem>>, %arg3: memref<1x8x8xf32, #tpu.memory_space<vmem>>, %arg4: memref<1x8x8xf32, #tpu.memory_space<vmem>>) attributes {dimension_semantics = [#tpu.dimension_semantics<parallel>], iteration_bounds = array<i64: 8>, scalar_prefetch = 0 : i64, scratch_operands = 0 : i64, tpu.core_type = #tpu.core_type<tc>, window_params = [{transform_indices = @transform_0, window_bounds = array<i64: 1, 8, 8>}, {transform_indices = @transform_1, window_bounds = array<i64: 1, 8, 8>}, {transform_indices = @transform_2, window_bounds = array<i64: 1, 8, 8>}, {transform_indices = @transform_3, window_bounds = array<i64: 1, 8, 8>}]} {
    %c0 = arith.constant 0 : index
    %c0_0 = arith.constant 0 : index
    %c0_1 = arith.constant 0 : index
    %0 = vector.load %arg1[%c0, %c0_0, %c0_1] : memref<1x8x8xf32, #tpu.memory_space<vmem>>, vector<1x8x8xf32>
    %1 = vector.shape_cast %0 : vector<1x8x8xf32> to vector<8x8xf32>
    %c0_2 = arith.constant 0 : index
    %c0_3 = arith.constant 0 : index
    %c0_4 = arith.constant 0 : index
    %2 = vector.load %arg2[%c0_2, %c0_3, %c0_4] : memref<1x8x8xf32, #tpu.memory_space<vmem>>, vector<1x8x8xf32>
    %3 = vector.shape_cast %2 : vector<1x8x8xf32> to vector<8x8xf32>
    %c0_5 = arith.constant 0 : index
    %c0_6 = arith.constant 0 : index
    %c0_7 = arith.constant 0 : index
    %4 = vector.load %arg3[%c0_5, %c0_6, %c0_7] : memref<1x8x8xf32, #tpu.memory_space<vmem>>, vector<1x8x8xf32>
    %5 = vector.shape_cast %4 : vector<1x8x8xf32> to vector<8x8xf32>
    %6 = tpu.transpose %3, [1, 0] : vector<8x8xf32> -> vector<8x8xf32>
    %cst = arith.constant dense<0.000000e+00> : vector<8x8xf32>
    %7 = tpu.matmul %1, %6, %cst {dimension_numbers = #tpu.dot_dimension_numbers<[1], [0], [0], [1], [0, 0, 1, 1], [], []>} : vector<8x8xf32>, vector<8x8xf32>, vector<8x8xf32> -> vector<8x8xf32>
    %cst_8 = arith.constant 0.353553385 : f32
    %8 = vector.broadcast %cst_8 : f32 to vector<8x8xf32>
    %9 = arith.mulf %7, %8 : vector<8x8xf32>
    %cst_9 = arith.constant dense<0xFF800000> : vector<8xf32>
    %10 = vector.multi_reduction <maximumf>, %9, %cst_9 [1] : vector<8x8xf32> to vector<8xf32>
    %11 = vector.shape_cast %10 : vector<8xf32> to vector<8x1xf32>
    %12 = vector.broadcast %11 : vector<8x1xf32> to vector<8x8xf32>
    %13 = arith.subf %9, %12 : vector<8x8xf32>
    %14 = math.exp %13 : vector<8x8xf32>
    %cst_10 = arith.constant dense<0.000000e+00> : vector<8xf32>
    %15 = vector.multi_reduction <add>, %14, %cst_10 [1] : vector<8x8xf32> to vector<8xf32>
    %16 = vector.shape_cast %15 : vector<8xf32> to vector<8x1xf32>
    %17 = vector.broadcast %16 : vector<8x1xf32> to vector<8x8xf32>
    %18 = arith.divf %14, %17 : vector<8x8xf32>
    %cst_11 = arith.constant dense<0.000000e+00> : vector<8x8xf32>
    %19 = tpu.matmul %18, %5, %cst_11 {dimension_numbers = #tpu.dot_dimension_numbers<[1], [0], [0], [1], [0, 0, 1, 1], [], []>} : vector<8x8xf32>, vector<8x8xf32>, vector<8x8xf32> -> vector<8x8xf32>
    %c0_12 = arith.constant 0 : index
    %c0_13 = arith.constant 0 : index
    %c0_14 = arith.constant 0 : index
    %20 = vector.load %arg4[%c0_12, %c0_13, %c0_14] : memref<1x8x8xf32, #tpu.memory_space<vmem>>, vector<1x8x8xf32>
    %21 = vector.shape_cast %20 : vector<1x8x8xf32> to vector<8x8xf32>
    %22 = vector.shape_cast %19 : vector<8x8xf32> to vector<1x8x8xf32>
    tpu.vector_store %arg4[%c0_12, %c0_13, %c0_14], %22 {strides = array<i32>} : memref<1x8x8xf32, #tpu.memory_space<vmem>>, vector<1x8x8xf32>,
    return
  }
  func.func @transform_0(%arg0: i32) -> (i32, i32, i32) {
    %c0_i32 = arith.constant 0 : i32
    %c0_i32_0 = arith.constant 0 : i32
    %c0_i32_1 = arith.constant 0 : i32
    return %arg0, %c0_i32, %c0_i32_0 : i32, i32, i32
  }
  func.func @transform_1(%arg0: i32) -> (i32, i32, i32) {
    %c0_i32 = arith.constant 0 : i32
    %c0_i32_0 = arith.constant 0 : i32
    %c0_i32_1 = arith.constant 0 : i32
    return %arg0, %c0_i32, %c0_i32_0 : i32, i32, i32
  }
  func.func @transform_2(%arg0: i32) -> (i32, i32, i32) {
    %c0_i32 = arith.constant 0 : i32
    %c0_i32_0 = arith.constant 0 : i32
    %c0_i32_1 = arith.constant 0 : i32
    return %arg0, %c0_i32, %c0_i32_0 : i32, i32, i32
  }
  func.func @transform_3(%arg0: i32) -> (i32, i32, i32) {
    %c0_i32 = arith.constant 0 : i32
    %c0_i32_0 = arith.constant 0 : i32
    %c0_i32_1 = arith.constant 0 : i32
    return %arg0, %c0_i32, %c0_i32_0 : i32, i32, i32
  }
}

module attributes {stable_mosaic.version = 11 : i64} {
  func.func @_matmul_bias_kernel(%arg0: i32, %arg1: i32, %arg2: i32, %arg3: memref<16x32xf32, #tpu.memory_space<vmem>>, %arg4: memref<32x32xf32, #tpu.memory_space<vmem>>, %arg5: memref<1x32xf32, #tpu.memory_space<vmem>>, %arg6: memref<16x32xf32, #tpu.memory_space<vmem>>, %arg7: memref<16x32xf32, #tpu.memory_space<vmem>>) attributes {dimension_semantics = [#tpu.dimension_semantics<parallel>, #tpu.dimension_semantics<parallel>, #tpu.dimension_semantics<arbitrary>], iteration_bounds = array<i64: 1, 1, 1>, scalar_prefetch = 0 : i64, scratch_operands = 1 : i64, tpu.core_type = #tpu.core_type<tc>, window_params = [{transform_indices = @transform_0, window_bounds = array<i64: 16, 32>}, {transform_indices = @transform_1, window_bounds = array<i64: 32, 32>}, {transform_indices = @transform_2, window_bounds = array<i64: 1, 32>}, {transform_indices = @transform_3, window_bounds = array<i64: 16, 32>}]} {
    %c0_i32 = arith.constant 0 : i32
    %0 = arith.cmpi eq, %arg2, %c0_i32 : i32
    %1 = arith.extui %0 : i1 to i32
    %c0_i32_0 = arith.constant 0 : i32
    %2 = arith.cmpi ne, %1, %c0_i32_0 : i32
    scf.if %2 {
      %cst_10 = arith.constant 0.000000e+00 : f32
      %12 = vector.broadcast %cst_10 : f32 to vector<16x32xf32>
      %c0_11 = arith.constant 0 : index
      %c0_12 = arith.constant 0 : index
      %13 = vector.load %arg7[%c0_11, %c0_12] : memref<16x32xf32, #tpu.memory_space<vmem>>, vector<16x32xf32>
      tpu.vector_store %arg7[%c0_11, %c0_12], %12 {strides = array<i32>} : memref<16x32xf32, #tpu.memory_space<vmem>>, vector<16x32xf32>,
    } else {
    }
    %c0 = arith.constant 0 : index
    %c0_1 = arith.constant 0 : index
    %3 = vector.load %arg7[%c0, %c0_1] : memref<16x32xf32, #tpu.memory_space<vmem>>, vector<16x32xf32>
    %c0_2 = arith.constant 0 : index
    %c0_3 = arith.constant 0 : index
    %4 = vector.load %arg3[%c0_2, %c0_3] : memref<16x32xf32, #tpu.memory_space<vmem>>, vector<16x32xf32>
    %c0_4 = arith.constant 0 : index
    %c0_5 = arith.constant 0 : index
    %5 = vector.load %arg4[%c0_4, %c0_5] : memref<32x32xf32, #tpu.memory_space<vmem>>, vector<32x32xf32>
    %cst = arith.constant dense<0.000000e+00> : vector<16x32xf32>
    %6 = tpu.matmul %4, %5, %cst {dimension_numbers = #tpu.dot_dimension_numbers<[1], [0], [0], [1], [0, 0, 1, 1], [], []>} : vector<16x32xf32>, vector<32x32xf32>, vector<16x32xf32> -> vector<16x32xf32>
    %7 = arith.addf %3, %6 : vector<16x32xf32>
    %c0_6 = arith.constant 0 : index
    %c0_7 = arith.constant 0 : index
    %8 = vector.load %arg7[%c0_6, %c0_7] : memref<16x32xf32, #tpu.memory_space<vmem>>, vector<16x32xf32>
    tpu.vector_store %arg7[%c0_6, %c0_7], %7 {strides = array<i32>} : memref<16x32xf32, #tpu.memory_space<vmem>>, vector<16x32xf32>,
    %c0_i32_8 = arith.constant 0 : i32
    %9 = arith.cmpi eq, %arg2, %c0_i32_8 : i32
    %10 = arith.extui %9 : i1 to i32
    %c0_i32_9 = arith.constant 0 : i32
    %11 = arith.cmpi ne, %10, %c0_i32_9 : i32
    scf.if %11 {
      %c0_10 = arith.constant 0 : index
      %c0_11 = arith.constant 0 : index
      %12 = vector.load %arg7[%c0_10, %c0_11] : memref<16x32xf32, #tpu.memory_space<vmem>>, vector<16x32xf32>
      %c0_12 = arith.constant 0 : index
      %c0_13 = arith.constant 0 : index
      %13 = vector.load %arg5[%c0_12, %c0_13] : memref<1x32xf32, #tpu.memory_space<vmem>>, vector<1x32xf32>
      %14 = vector.broadcast %13 : vector<1x32xf32> to vector<16x32xf32>
      %15 = arith.addf %12, %14 : vector<16x32xf32>
      %c0_14 = arith.constant 0 : index
      %c0_15 = arith.constant 0 : index
      %16 = vector.load %arg6[%c0_14, %c0_15] : memref<16x32xf32, #tpu.memory_space<vmem>>, vector<16x32xf32>
      tpu.vector_store %arg6[%c0_14, %c0_15], %15 {strides = array<i32>} : memref<16x32xf32, #tpu.memory_space<vmem>>, vector<16x32xf32>,
    } else {
    }
    return
  }
  func.func @transform_0(%arg0: i32, %arg1: i32, %arg2: i32) -> (i32, i32) {
    %c0_i32 = arith.constant 0 : i32
    return %arg0, %arg2 : i32, i32
  }
  func.func @transform_1(%arg0: i32, %arg1: i32, %arg2: i32) -> (i32, i32) {
    %c0_i32 = arith.constant 0 : i32
    return %arg2, %arg1 : i32, i32
  }
  func.func @transform_2(%arg0: i32, %arg1: i32, %arg2: i32) -> (i32, i32) {
    %c0_i32 = arith.constant 0 : i32
    %c0_i32_0 = arith.constant 0 : i32
    return %c0_i32, %arg1 : i32, i32
  }
  func.func @transform_3(%arg0: i32, %arg1: i32, %arg2: i32) -> (i32, i32) {
    %c0_i32 = arith.constant 0 : i32
    return %arg0, %arg1 : i32, i32
  }
}

module attributes {stable_mosaic.version = 11 : i64} {
  func.func @_add_layernorm_kernel(%arg0: i32, %arg1: memref<16x32xf32, #tpu.memory_space<vmem>>, %arg2: memref<16x32xf32, #tpu.memory_space<vmem>>, %arg3: memref<1x32xf32, #tpu.memory_space<vmem>>, %arg4: memref<1x32xf32, #tpu.memory_space<vmem>>, %arg5: memref<16x32xf32, #tpu.memory_space<vmem>>) attributes {dimension_semantics = [#tpu.dimension_semantics<parallel>], iteration_bounds = array<i64: 1>, scalar_prefetch = 0 : i64, scratch_operands = 0 : i64, tpu.core_type = #tpu.core_type<tc>, window_params = [{transform_indices = @transform_0, window_bounds = array<i64: 16, 32>}, {transform_indices = @transform_1, window_bounds = array<i64: 16, 32>}, {pipeline_mode = #tpu.pipeline_mode<synchronous>, transform_indices = @transform_2, window_bounds = array<i64: 1, 32>}, {pipeline_mode = #tpu.pipeline_mode<synchronous>, transform_indices = @transform_3, window_bounds = array<i64: 1, 32>}, {transform_indices = @transform_4, window_bounds = array<i64: 16, 32>}]} {
    %c0 = arith.constant 0 : index
    %c0_0 = arith.constant 0 : index
    %0 = vector.load %arg1[%c0, %c0_0] : memref<16x32xf32, #tpu.memory_space<vmem>>, vector<16x32xf32>
    %c0_1 = arith.constant 0 : index
    %c0_2 = arith.constant 0 : index
    %1 = vector.load %arg2[%c0_1, %c0_2] : memref<16x32xf32, #tpu.memory_space<vmem>>, vector<16x32xf32>
    %2 = arith.addf %0, %1 : vector<16x32xf32>
    %cst = arith.constant dense<0.000000e+00> : vector<16xf32>
    %3 = vector.multi_reduction <add>, %2, %cst [1] : vector<16x32xf32> to vector<16xf32>
    %4 = vector.shape_cast %3 : vector<16xf32> to vector<16x1xf32>
    %cst_3 = arith.constant 3.200000e+01 : f32
    %5 = vector.broadcast %cst_3 : f32 to vector<16x1xf32>
    %6 = arith.divf %4, %5 : vector<16x1xf32>
    %7 = vector.broadcast %6 : vector<16x1xf32> to vector<16x32xf32>
    %8 = arith.subf %2, %7 : vector<16x32xf32>
    %9 = arith.mulf %8, %8 : vector<16x32xf32>
    %cst_4 = arith.constant dense<0.000000e+00> : vector<16xf32>
    %10 = vector.multi_reduction <add>, %9, %cst_4 [1] : vector<16x32xf32> to vector<16xf32>
    %11 = vector.shape_cast %10 : vector<16xf32> to vector<16x1xf32>
    %cst_5 = arith.constant 3.200000e+01 : f32
    %12 = vector.broadcast %cst_5 : f32 to vector<16x1xf32>
    %13 = arith.divf %11, %12 : vector<16x1xf32>
    %cst_6 = arith.constant 9.99999974E-6 : f32
    %14 = vector.broadcast %cst_6 : f32 to vector<16x1xf32>
    %15 = arith.addf %13, %14 : vector<16x1xf32>
    %16 = math.rsqrt %15 : vector<16x1xf32>
    %17 = vector.broadcast %16 : vector<16x1xf32> to vector<16x32xf32>
    %18 = arith.mulf %8, %17 : vector<16x32xf32>
    %c0_7 = arith.constant 0 : index
    %c0_8 = arith.constant 0 : index
    %19 = vector.load %arg3[%c0_7, %c0_8] : memref<1x32xf32, #tpu.memory_space<vmem>>, vector<1x32xf32>
    %20 = vector.broadcast %19 : vector<1x32xf32> to vector<16x32xf32>
    %21 = arith.mulf %18, %20 : vector<16x32xf32>
    %c0_9 = arith.constant 0 : index
    %c0_10 = arith.constant 0 : index
    %22 = vector.load %arg4[%c0_9, %c0_10] : memref<1x32xf32, #tpu.memory_space<vmem>>, vector<1x32xf32>
    %23 = vector.broadcast %22 : vector<1x32xf32> to vector<16x32xf32>
    %24 = arith.addf %21, %23 : vector<16x32xf32>
    %c0_11 = arith.constant 0 : index
    %c0_12 = arith.constant 0 : index
    %25 = vector.load %arg5[%c0_11, %c0_12] : memref<16x32xf32, #tpu.memory_space<vmem>>, vector<16x32xf32>
    tpu.vector_store %arg5[%c0_11, %c0_12], %24 {strides = array<i32>} : memref<16x32xf32, #tpu.memory_space<vmem>>, vector<16x32xf32>,
    return
  }
  func.func @transform_0(%arg0: i32) -> (i32, i32) {
    %c0_i32 = arith.constant 0 : i32
    %c0_i32_0 = arith.constant 0 : i32
    return %arg0, %c0_i32 : i32, i32
  }
  func.func @transform_1(%arg0: i32) -> (i32, i32) {
    %c0_i32 = arith.constant 0 : i32
    %c0_i32_0 = arith.constant 0 : i32
    return %arg0, %c0_i32 : i32, i32
  }
  func.func @transform_2(%arg0: i32) -> (i32, i32) {
    %c0_i32 = arith.constant 0 : i32
    %c0_i32_0 = arith.constant 0 : i32
    %c0_i32_1 = arith.constant 0 : i32
    return %c0_i32, %c0_i32_0 : i32, i32
  }
  func.func @transform_3(%arg0: i32) -> (i32, i32) {
    %c0_i32 = arith.constant 0 : i32
    %c0_i32_0 = arith.constant 0 : i32
    %c0_i32_1 = arith.constant 0 : i32
    return %c0_i32, %c0_i32_0 : i32, i32
  }
  func.func @transform_4(%arg0: i32) -> (i32, i32) {
    %c0_i32 = arith.constant 0 : i32
    %c0_i32_0 = arith.constant 0 : i32
    return %arg0, %c0_i32 : i32, i32
  }
}

module attributes {stable_mosaic.version = 11 : i64} {
  func.func @_matmul_bias_kernel(%arg0: i32, %arg1: i32, %arg2: i32, %arg3: memref<16x64xf32, #tpu.memory_space<vmem>>, %arg4: memref<64x32xf32, #tpu.memory_space<vmem>>, %arg5: memref<1x32xf32, #tpu.memory_space<vmem>>, %arg6: memref<16x32xf32, #tpu.memory_space<vmem>>, %arg7: memref<16x32xf32, #tpu.memory_space<vmem>>) attributes {dimension_semantics = [#tpu.dimension_semantics<parallel>, #tpu.dimension_semantics<parallel>, #tpu.dimension_semantics<arbitrary>], iteration_bounds = array<i64: 1, 1, 1>, scalar_prefetch = 0 : i64, scratch_operands = 1 : i64, tpu.core_type = #tpu.core_type<tc>, window_params = [{transform_indices = @transform_0, window_bounds = array<i64: 16, 64>}, {transform_indices = @transform_1, window_bounds = array<i64: 64, 32>}, {transform_indices = @transform_2, window_bounds = array<i64: 1, 32>}, {transform_indices = @transform_3, window_bounds = array<i64: 16, 32>}]} {
    %c0_i32 = arith.constant 0 : i32
    %0 = arith.cmpi eq, %arg2, %c0_i32 : i32
    %1 = arith.extui %0 : i1 to i32
    %c0_i32_0 = arith.constant 0 : i32
    %2 = arith.cmpi ne, %1, %c0_i32_0 : i32
    scf.if %2 {
      %cst_10 = arith.constant 0.000000e+00 : f32
      %12 = vector.broadcast %cst_10 : f32 to vector<16x32xf32>
      %c0_11 = arith.constant 0 : index
      %c0_12 = arith.constant 0 : index
      %13 = vector.load %arg7[%c0_11, %c0_12] : memref<16x32xf32, #tpu.memory_space<vmem>>, vector<16x32xf32>
      tpu.vector_store %arg7[%c0_11, %c0_12], %12 {strides = array<i32>} : memref<16x32xf32, #tpu.memory_space<vmem>>, vector<16x32xf32>,
    } else {
    }
    %c0 = arith.constant 0 : index
    %c0_1 = arith.constant 0 : index
    %3 = vector.load %arg7[%c0, %c0_1] : memref<16x32xf32, #tpu.memory_space<vmem>>, vector<16x32xf32>
    %c0_2 = arith.constant 0 : index
    %c0_3 = arith.constant 0 : index
    %4 = vector.load %arg3[%c0_2, %c0_3] : memref<16x64xf32, #tpu.memory_space<vmem>>, vector<16x64xf32>
    %c0_4 = arith.constant 0 : index
    %c0_5 = arith.constant 0 : index
    %5 = vector.load %arg4[%c0_4, %c0_5] : memref<64x32xf32, #tpu.memory_space<vmem>>, vector<64x32xf32>
    %cst = arith.constant dense<0.000000e+00> : vector<16x32xf32>
    %6 = tpu.matmul %4, %5, %cst {dimension_numbers = #tpu.dot_dimension_numbers<[1], [0], [0], [1], [0, 0, 1, 1], [], []>} : vector<16x64xf32>, vector<64x32xf32>, vector<16x32xf32> -> vector<16x32xf32>
    %7 = arith.addf %3, %6 : vector<16x32xf32>
    %c0_6 = arith.constant 0 : index
    %c0_7 = arith.constant 0 : index
    %8 = vector.load %arg7[%c0_6, %c0_7] : memref<16x32xf32, #tpu.memory_space<vmem>>, vector<16x32xf32>
    tpu.vector_store %arg7[%c0_6, %c0_7], %7 {strides = array<i32>} : memref<16x32xf32, #tpu.memory_space<vmem>>, vector<16x32xf32>,
    %c0_i32_8 = arith.constant 0 : i32
    %9 = arith.cmpi eq, %arg2, %c0_i32_8 : i32
    %10 = arith.extui %9 : i1 to i32
    %c0_i32_9 = arith.constant 0 : i32
    %11 = arith.cmpi ne, %10, %c0_i32_9 : i32
    scf.if %11 {
      %c0_10 = arith.constant 0 : index
      %c0_11 = arith.constant 0 : index
      %12 = vector.load %arg7[%c0_10, %c0_11] : memref<16x32xf32, #tpu.memory_space<vmem>>, vector<16x32xf32>
      %c0_12 = arith.constant 0 : index
      %c0_13 = arith.constant 0 : index
      %13 = vector.load %arg5[%c0_12, %c0_13] : memref<1x32xf32, #tpu.memory_space<vmem>>, vector<1x32xf32>
      %14 = vector.broadcast %13 : vector<1x32xf32> to vector<16x32xf32>
      %15 = arith.addf %12, %14 : vector<16x32xf32>
      %c0_14 = arith.constant 0 : index
      %c0_15 = arith.constant 0 : index
      %16 = vector.load %arg6[%c0_14, %c0_15] : memref<16x32xf32, #tpu.memory_space<vmem>>, vector<16x32xf32>
      tpu.vector_store %arg6[%c0_14, %c0_15], %15 {strides = array<i32>} : memref<16x32xf32, #tpu.memory_space<vmem>>, vector<16x32xf32>,
    } else {
    }
    return
  }
  func.func @transform_0(%arg0: i32, %arg1: i32, %arg2: i32) -> (i32, i32) {
    %c0_i32 = arith.constant 0 : i32
    return %arg0, %arg2 : i32, i32
  }
  func.func @transform_1(%arg0: i32, %arg1: i32, %arg2: i32) -> (i32, i32) {
    %c0_i32 = arith.constant 0 : i32
    return %arg2, %arg1 : i32, i32
  }
  func.func @transform_2(%arg0: i32, %arg1: i32, %arg2: i32) -> (i32, i32) {
    %c0_i32 = arith.constant 0 : i32
    %c0_i32_0 = arith.constant 0 : i32
    return %c0_i32, %arg1 : i32, i32
  }
  func.func @transform_3(%arg0: i32, %arg1: i32, %arg2: i32) -> (i32, i32) {
    %c0_i32 = arith.constant 0 : i32
    return %arg0, %arg1 : i32, i32
  }
}

module attributes {stable_mosaic.version = 11 : i64} {
  func.func @_add_layernorm_kernel(%arg0: i32, %arg1: memref<16x32xf32, #tpu.memory_space<vmem>>, %arg2: memref<16x32xf32, #tpu.memory_space<vmem>>, %arg3: memref<1x32xf32, #tpu.memory_space<vmem>>, %arg4: memref<1x32xf32, #tpu.memory_space<vmem>>, %arg5: memref<16x32xf32, #tpu.memory_space<vmem>>) attributes {dimension_semantics = [#tpu.dimension_semantics<parallel>], iteration_bounds = array<i64: 1>, scalar_prefetch = 0 : i64, scratch_operands = 0 : i64, tpu.core_type = #tpu.core_type<tc>, window_params = [{transform_indices = @transform_0, window_bounds = array<i64: 16, 32>}, {transform_indices = @transform_1, window_bounds = array<i64: 16, 32>}, {pipeline_mode = #tpu.pipeline_mode<synchronous>, transform_indices = @transform_2, window_bounds = array<i64: 1, 32>}, {pipeline_mode = #tpu.pipeline_mode<synchronous>, transform_indices = @transform_3, window_bounds = array<i64: 1, 32>}, {transform_indices = @transform_4, window_bounds = array<i64: 16, 32>}]} {
    %c0 = arith.constant 0 : index
    %c0_0 = arith.constant 0 : index
    %0 = vector.load %arg1[%c0, %c0_0] : memref<16x32xf32, #tpu.memory_space<vmem>>, vector<16x32xf32>
    %c0_1 = arith.constant 0 : index
    %c0_2 = arith.constant 0 : index
    %1 = vector.load %arg2[%c0_1, %c0_2] : memref<16x32xf32, #tpu.memory_space<vmem>>, vector<16x32xf32>
    %2 = arith.addf %0, %1 : vector<16x32xf32>
    %cst = arith.constant dense<0.000000e+00> : vector<16xf32>
    %3 = vector.multi_reduction <add>, %2, %cst [1] : vector<16x32xf32> to vector<16xf32>
    %4 = vector.shape_cast %3 : vector<16xf32> to vector<16x1xf32>
    %cst_3 = arith.constant 3.200000e+01 : f32
    %5 = vector.broadcast %cst_3 : f32 to vector<16x1xf32>
    %6 = arith.divf %4, %5 : vector<16x1xf32>
    %7 = vector.broadcast %6 : vector<16x1xf32> to vector<16x32xf32>
    %8 = arith.subf %2, %7 : vector<16x32xf32>
    %9 = arith.mulf %8, %8 : vector<16x32xf32>
    %cst_4 = arith.constant dense<0.000000e+00> : vector<16xf32>
    %10 = vector.multi_reduction <add>, %9, %cst_4 [1] : vector<16x32xf32> to vector<16xf32>
    %11 = vector.shape_cast %10 : vector<16xf32> to vector<16x1xf32>
    %cst_5 = arith.constant 3.200000e+01 : f32
    %12 = vector.broadcast %cst_5 : f32 to vector<16x1xf32>
    %13 = arith.divf %11, %12 : vector<16x1xf32>
    %cst_6 = arith.constant 9.99999974E-6 : f32
    %14 = vector.broadcast %cst_6 : f32 to vector<16x1xf32>
    %15 = arith.addf %13, %14 : vector<16x1xf32>
    %16 = math.rsqrt %15 : vector<16x1xf32>
    %17 = vector.broadcast %16 : vector<16x1xf32> to vector<16x32xf32>
    %18 = arith.mulf %8, %17 : vector<16x32xf32>
    %c0_7 = arith.constant 0 : index
    %c0_8 = arith.constant 0 : index
    %19 = vector.load %arg3[%c0_7, %c0_8] : memref<1x32xf32, #tpu.memory_space<vmem>>, vector<1x32xf32>
    %20 = vector.broadcast %19 : vector<1x32xf32> to vector<16x32xf32>
    %21 = arith.mulf %18, %20 : vector<16x32xf32>
    %c0_9 = arith.constant 0 : index
    %c0_10 = arith.constant 0 : index
    %22 = vector.load %arg4[%c0_9, %c0_10] : memref<1x32xf32, #tpu.memory_space<vmem>>, vector<1x32xf32>
    %23 = vector.broadcast %22 : vector<1x32xf32> to vector<16x32xf32>
    %24 = arith.addf %21, %23 : vector<16x32xf32>
    %c0_11 = arith.constant 0 : index
    %c0_12 = arith.constant 0 : index
    %25 = vector.load %arg5[%c0_11, %c0_12] : memref<16x32xf32, #tpu.memory_space<vmem>>, vector<16x32xf32>
    tpu.vector_store %arg5[%c0_11, %c0_12], %24 {strides = array<i32>} : memref<16x32xf32, #tpu.memory_space<vmem>>, vector<16x32xf32>,
    return
  }
  func.func @transform_0(%arg0: i32) -> (i32, i32) {
    %c0_i32 = arith.constant 0 : i32
    %c0_i32_0 = arith.constant 0 : i32
    return %arg0, %c0_i32 : i32, i32
  }
  func.func @transform_1(%arg0: i32) -> (i32, i32) {
    %c0_i32 = arith.constant 0 : i32
    %c0_i32_0 = arith.constant 0 : i32
    return %arg0, %c0_i32 : i32, i32
  }
  func.func @transform_2(%arg0: i32) -> (i32, i32) {
    %c0_i32 = arith.constant 0 : i32
    %c0_i32_0 = arith.constant 0 : i32
    %c0_i32_1 = arith.constant 0 : i32
    return %c0_i32, %c0_i32_0 : i32, i32
  }
  func.func @transform_3(%arg0: i32) -> (i32, i32) {
    %c0_i32 = arith.constant 0 : i32
    %c0_i32_0 = arith.constant 0 : i32
    %c0_i32_1 = arith.constant 0 : i32
    return %c0_i32, %c0_i32_0 : i32, i32
  }
  func.func @transform_4(%arg0: i32) -> (i32, i32) {
    %c0_i32 = arith.constant 0 : i32
    %c0_i32_0 = arith.constant 0 : i32
    return %arg0, %c0_i32 : i32, i32
  }
}

module attributes {stable_mosaic.version = 11 : i64} {
  func.func @_matmul_bias_kernel(%arg0: i32, %arg1: i32, %arg2: i32, %arg3: memref<16x32xf32, #tpu.memory_space<vmem>>, %arg4: memref<32x96xf32, #tpu.memory_space<vmem>>, %arg5: memref<1x96xf32, #tpu.memory_space<vmem>>, %arg6: memref<16x96xf32, #tpu.memory_space<vmem>>, %arg7: memref<16x96xf32, #tpu.memory_space<vmem>>) attributes {dimension_semantics = [#tpu.dimension_semantics<parallel>, #tpu.dimension_semantics<parallel>, #tpu.dimension_semantics<arbitrary>], iteration_bounds = array<i64: 1, 1, 1>, scalar_prefetch = 0 : i64, scratch_operands = 1 : i64, tpu.core_type = #tpu.core_type<tc>, window_params = [{transform_indices = @transform_0, window_bounds = array<i64: 16, 32>}, {transform_indices = @transform_1, window_bounds = array<i64: 32, 96>}, {transform_indices = @transform_2, window_bounds = array<i64: 1, 96>}, {transform_indices = @transform_3, window_bounds = array<i64: 16, 96>}]} {
    %c0_i32 = arith.constant 0 : i32
    %0 = arith.cmpi eq, %arg2, %c0_i32 : i32
    %1 = arith.extui %0 : i1 to i32
    %c0_i32_0 = arith.constant 0 : i32
    %2 = arith.cmpi ne, %1, %c0_i32_0 : i32
    scf.if %2 {
      %cst_10 = arith.constant 0.000000e+00 : f32
      %12 = vector.broadcast %cst_10 : f32 to vector<16x96xf32>
      %c0_11 = arith.constant 0 : index
      %c0_12 = arith.constant 0 : index
      %13 = vector.load %arg7[%c0_11, %c0_12] : memref<16x96xf32, #tpu.memory_space<vmem>>, vector<16x96xf32>
      tpu.vector_store %arg7[%c0_11, %c0_12], %12 {strides = array<i32>} : memref<16x96xf32, #tpu.memory_space<vmem>>, vector<16x96xf32>,
    } else {
    }
    %c0 = arith.constant 0 : index
    %c0_1 = arith.constant 0 : index
    %3 = vector.load %arg7[%c0, %c0_1] : memref<16x96xf32, #tpu.memory_space<vmem>>, vector<16x96xf32>
    %c0_2 = arith.constant 0 : index
    %c0_3 = arith.constant 0 : index
    %4 = vector.load %arg3[%c0_2, %c0_3] : memref<16x32xf32, #tpu.memory_space<vmem>>, vector<16x32xf32>
    %c0_4 = arith.constant 0 : index
    %c0_5 = arith.constant 0 : index
    %5 = vector.load %arg4[%c0_4, %c0_5] : memref<32x96xf32, #tpu.memory_space<vmem>>, vector<32x96xf32>
    %cst = arith.constant dense<0.000000e+00> : vector<16x96xf32>
    %6 = tpu.matmul %4, %5, %cst {dimension_numbers = #tpu.dot_dimension_numbers<[1], [0], [0], [1], [0, 0, 1, 1], [], []>} : vector<16x32xf32>, vector<32x96xf32>, vector<16x96xf32> -> vector<16x96xf32>
    %7 = arith.addf %3, %6 : vector<16x96xf32>
    %c0_6 = arith.constant 0 : index
    %c0_7 = arith.constant 0 : index
    %8 = vector.load %arg7[%c0_6, %c0_7] : memref<16x96xf32, #tpu.memory_space<vmem>>, vector<16x96xf32>
    tpu.vector_store %arg7[%c0_6, %c0_7], %7 {strides = array<i32>} : memref<16x96xf32, #tpu.memory_space<vmem>>, vector<16x96xf32>,
    %c0_i32_8 = arith.constant 0 : i32
    %9 = arith.cmpi eq, %arg2, %c0_i32_8 : i32
    %10 = arith.extui %9 : i1 to i32
    %c0_i32_9 = arith.constant 0 : i32
    %11 = arith.cmpi ne, %10, %c0_i32_9 : i32
    scf.if %11 {
      %c0_10 = arith.constant 0 : index
      %c0_11 = arith.constant 0 : index
      %12 = vector.load %arg7[%c0_10, %c0_11] : memref<16x96xf32, #tpu.memory_space<vmem>>, vector<16x96xf32>
      %c0_12 = arith.constant 0 : index
      %c0_13 = arith.constant 0 : index
      %13 = vector.load %arg5[%c0_12, %c0_13] : memref<1x96xf32, #tpu.memory_space<vmem>>, vector<1x96xf32>
      %14 = vector.broadcast %13 : vector<1x96xf32> to vector<16x96xf32>
      %15 = arith.addf %12, %14 : vector<16x96xf32>
      %c0_14 = arith.constant 0 : index
      %c0_15 = arith.constant 0 : index
      %16 = vector.load %arg6[%c0_14, %c0_15] : memref<16x96xf32, #tpu.memory_space<vmem>>, vector<16x96xf32>
      tpu.vector_store %arg6[%c0_14, %c0_15], %15 {strides = array<i32>} : memref<16x96xf32, #tpu.memory_space<vmem>>, vector<16x96xf32>,
    } else {
    }
    return
  }
  func.func @transform_0(%arg0: i32, %arg1: i32, %arg2: i32) -> (i32, i32) {
    %c0_i32 = arith.constant 0 : i32
    return %arg0, %arg2 : i32, i32
  }
  func.func @transform_1(%arg0: i32, %arg1: i32, %arg2: i32) -> (i32, i32) {
    %c0_i32 = arith.constant 0 : i32
    return %arg2, %arg1 : i32, i32
  }
  func.func @transform_2(%arg0: i32, %arg1: i32, %arg2: i32) -> (i32, i32) {
    %c0_i32 = arith.constant 0 : i32
    %c0_i32_0 = arith.constant 0 : i32
    return %c0_i32, %arg1 : i32, i32
  }
  func.func @transform_3(%arg0: i32, %arg1: i32, %arg2: i32) -> (i32, i32) {
    %c0_i32 = arith.constant 0 : i32
    return %arg0, %arg1 : i32, i32
  }
}

module attributes {stable_mosaic.version = 11 : i64} {
  func.func @_matmul_bias_kernel(%arg0: i32, %arg1: i32, %arg2: i32, %arg3: memref<16x32xf32, #tpu.memory_space<vmem>>, %arg4: memref<32x64xf32, #tpu.memory_space<vmem>>, %arg5: memref<1x64xf32, #tpu.memory_space<vmem>>, %arg6: memref<16x64xf32, #tpu.memory_space<vmem>>, %arg7: memref<16x64xf32, #tpu.memory_space<vmem>>) attributes {dimension_semantics = [#tpu.dimension_semantics<parallel>, #tpu.dimension_semantics<parallel>, #tpu.dimension_semantics<arbitrary>], iteration_bounds = array<i64: 1, 1, 1>, scalar_prefetch = 0 : i64, scratch_operands = 1 : i64, tpu.core_type = #tpu.core_type<tc>, window_params = [{transform_indices = @transform_0, window_bounds = array<i64: 16, 32>}, {transform_indices = @transform_1, window_bounds = array<i64: 32, 64>}, {transform_indices = @transform_2, window_bounds = array<i64: 1, 64>}, {transform_indices = @transform_3, window_bounds = array<i64: 16, 64>}]} {
    %c0_i32 = arith.constant 0 : i32
    %0 = arith.cmpi eq, %arg2, %c0_i32 : i32
    %1 = arith.extui %0 : i1 to i32
    %c0_i32_0 = arith.constant 0 : i32
    %2 = arith.cmpi ne, %1, %c0_i32_0 : i32
    scf.if %2 {
      %cst_10 = arith.constant 0.000000e+00 : f32
      %12 = vector.broadcast %cst_10 : f32 to vector<16x64xf32>
      %c0_11 = arith.constant 0 : index
      %c0_12 = arith.constant 0 : index
      %13 = vector.load %arg7[%c0_11, %c0_12] : memref<16x64xf32, #tpu.memory_space<vmem>>, vector<16x64xf32>
      tpu.vector_store %arg7[%c0_11, %c0_12], %12 {strides = array<i32>} : memref<16x64xf32, #tpu.memory_space<vmem>>, vector<16x64xf32>,
    } else {
    }
    %c0 = arith.constant 0 : index
    %c0_1 = arith.constant 0 : index
    %3 = vector.load %arg7[%c0, %c0_1] : memref<16x64xf32, #tpu.memory_space<vmem>>, vector<16x64xf32>
    %c0_2 = arith.constant 0 : index
    %c0_3 = arith.constant 0 : index
    %4 = vector.load %arg3[%c0_2, %c0_3] : memref<16x32xf32, #tpu.memory_space<vmem>>, vector<16x32xf32>
    %c0_4 = arith.constant 0 : index
    %c0_5 = arith.constant 0 : index
    %5 = vector.load %arg4[%c0_4, %c0_5] : memref<32x64xf32, #tpu.memory_space<vmem>>, vector<32x64xf32>
    %cst = arith.constant dense<0.000000e+00> : vector<16x64xf32>
    %6 = tpu.matmul %4, %5, %cst {dimension_numbers = #tpu.dot_dimension_numbers<[1], [0], [0], [1], [0, 0, 1, 1], [], []>} : vector<16x32xf32>, vector<32x64xf32>, vector<16x64xf32> -> vector<16x64xf32>
    %7 = arith.addf %3, %6 : vector<16x64xf32>
    %c0_6 = arith.constant 0 : index
    %c0_7 = arith.constant 0 : index
    %8 = vector.load %arg7[%c0_6, %c0_7] : memref<16x64xf32, #tpu.memory_space<vmem>>, vector<16x64xf32>
    tpu.vector_store %arg7[%c0_6, %c0_7], %7 {strides = array<i32>} : memref<16x64xf32, #tpu.memory_space<vmem>>, vector<16x64xf32>,
    %c0_i32_8 = arith.constant 0 : i32
    %9 = arith.cmpi eq, %arg2, %c0_i32_8 : i32
    %10 = arith.extui %9 : i1 to i32
    %c0_i32_9 = arith.constant 0 : i32
    %11 = arith.cmpi ne, %10, %c0_i32_9 : i32
    scf.if %11 {
      %c0_10 = arith.constant 0 : index
      %c0_11 = arith.constant 0 : index
      %12 = vector.load %arg7[%c0_10, %c0_11] : memref<16x64xf32, #tpu.memory_space<vmem>>, vector<16x64xf32>
      %c0_12 = arith.constant 0 : index
      %c0_13 = arith.constant 0 : index
      %13 = vector.load %arg5[%c0_12, %c0_13] : memref<1x64xf32, #tpu.memory_space<vmem>>, vector<1x64xf32>
      %14 = vector.broadcast %13 : vector<1x64xf32> to vector<16x64xf32>
      %15 = arith.addf %12, %14 : vector<16x64xf32>
      %cst_14 = arith.constant 0.000000e+00 : f32
      %16 = vector.broadcast %cst_14 : f32 to vector<16x64xf32>
      %17 = arith.maximumf %15, %16 : vector<16x64xf32>
      %c0_15 = arith.constant 0 : index
      %c0_16 = arith.constant 0 : index
      %18 = vector.load %arg6[%c0_15, %c0_16] : memref<16x64xf32, #tpu.memory_space<vmem>>, vector<16x64xf32>
      tpu.vector_store %arg6[%c0_15, %c0_16], %17 {strides = array<i32>} : memref<16x64xf32, #tpu.memory_space<vmem>>, vector<16x64xf32>,
    } else {
    }
    return
  }
  func.func @transform_0(%arg0: i32, %arg1: i32, %arg2: i32) -> (i32, i32) {
    %c0_i32 = arith.constant 0 : i32
    return %arg0, %arg2 : i32, i32
  }
  func.func @transform_1(%arg0: i32, %arg1: i32, %arg2: i32) -> (i32, i32) {
    %c0_i32 = arith.constant 0 : i32
    return %arg2, %arg1 : i32, i32
  }
  func.func @transform_2(%arg0: i32, %arg1: i32, %arg2: i32) -> (i32, i32) {
    %c0_i32 = arith.constant 0 : i32
    %c0_i32_0 = arith.constant 0 : i32
    return %c0_i32, %arg1 : i32, i32
  }
  func.func @transform_3(%arg0: i32, %arg1: i32, %arg2: i32) -> (i32, i32) {
    %c0_i32 = arith.constant 0 : i32
    return %arg0, %arg1 : i32, i32
  }
}

</mosaic_0001>

<bundles_post_ra>
// kernel: transformer_encoder.15
= control target key start
LH: loop header
LB: loop body
LE: loop exit
PB: predicated region body
PF: predicated region fallthrough
CT: control target
= control target key end

     0   :  { %s410_s12 = smov 0   ;;  %s445_s0 = inlined_call_operand.vmem [shape: f32[8,8,8], index: 0, kind: input, shape index: {}]   ;;  %s446_s1 = inlined_call_operand.vmem [shape: f32[8,8,8], index: 1, kind: input, shape index: {}]   ;;  %s447_s2 = inlined_call_operand.vmem [shape: f32[8,8,8], index: 2, kind: input, shape index: {}]   ;;  %s448_s3 = inlined_call_operand.vmem [shape: f32[8,8,8], index: 3, kind: output, shape index: {}]  }
   0x1 LB: > { %s356_s13 = sadd.s32 4294967295, %s388_s12   ;;  %p360_p0 = scmp.ge.s32.totalorder %s388_s12, 1  ;;  %s388_s12 = sphi %s410_s12, %s13_s12  }
   0x2   : > { %p154_p1 = scmp.lt.s32.totalorder %s388_s12, 9 }
   0x4   : > { %p155_p2 = pnand %p360_p0, %p154_p1 }
   0x5   : > { %p184_p3 = scmp.lt.s32.totalorder (!%p155_p2), %s356_s13, 7 }
   0x6   : > { %158 = sbr.rel (%p155_p2) target bundleno = 537 (0x219), region = 32 }
   0xb   : > { %s450_s13 = smov (!%p184_p3, %s356_s13), 7  ;;  %vm203_vm0 = vcmask 64512  }
   0xc   : > { %s418_s14 = sshll.u32 %s450_s13, 3 }
   0xd   : > { %s191_s17 = scalar_lea.vmem %s446_s1, %s418_s14  ;;  %s187_s20 = scalar_lea.vmem %s445_s0, %s418_s14 }
   0xe   : > { %v201_v0 = vld [vmem:[%s191_s17] sm:$0xff]  ;;  %s195_s23 = scalar_lea.vmem %s447_s2, %s418_s14  ;;  %s199_s26 = scalar_lea.vmem %s448_s3, %s418_s14 }
   0xf   : > { %365 = vmatpush.xpose.msk.msra.mxu0 %vm203_vm0, %v201_v0  ;;  %v200_v1 = vld [vmem:[%s187_s20] sm:$0xff] }
  0x10   : > { %v202_v10 = vld [vmem:[%s195_s23] sm:$0xff] }
  0x11   : > { %273 = vmatpush.msra.mxu1 %v202_v10 }
  0x12   : > { %366 = vmatmul.msk.f32.vlgmr.msra.gmra.mxu0 %vm203_vm0, %v200_v1 }
  0x8f   : > { %v227_v2 = vpop.f32.mrf.mxu0 }
  0x90   : > { %v230_v3 = vmul.f32 0.35355338, %v227_v2 }
  0x92   : > { %v231_v4 = vsel %vm203_vm0, %v230_v3, -inf }
  0x93   : > { %232 = vmax.xlane.f32.xlu0 %v231_v4 }
 0x106   : > { %v233_v5 = vpop.xlane.xlu0 %232 }
 0x107   : > { %v234_v6 = vsub.f32 %v230_v3, %v233_v5 }
 0x109   : > { %v235_v7 = vmul.f32 1.442695, %v234_v6 }
 0x10b   : > { %378 = vpow2.f32 %v235_v7 }
 0x111   : > { %v379_v8 = vpop.eup %378 }
 0x112   : > { %v237_v9 = vsel %vm203_vm0, %v379_v8, 0.0 }
 0x113   : > { %238 = vadd.xlane.f32.xlu0 %v237_v9 }
 0x186   : > { %v239_v11 = vpop.xlane.xlu0 %238 }
 0x187   : > { %380 = vrcp.f32 %v239_v11  ;;  %v251_v15 = vand.u32 2147483648, %v239_v11  ;;  %v249_v17 = vand.u32 2147483647, %v239_v11  ;;  %vm245_vm2 = vweird.f32 %v239_v11 }
 0x189   : > { %v252_v19 = vor.u32 1.1754944e-38, %v251_v15  ;;  %vm250_vm4 = vcmp.eq.f32.partialorder %v249_v17, 8.507059e+37 }
 0x18d   : > { %v381_v12 = vpop.eup %380 }
 0x18e   : > { %v241_v13 = vmul.f32 %v381_v12, %v239_v11  ;;  %vm246_vm1 = vweird.f32 %v381_v12 }
 0x18f   : > { %vm247_vm3 = vmor %vm245_vm2, %vm246_vm1 }
 0x190   : > { %v242_v14 = vsub.f32 1.0, %v241_v13 }
 0x192   : > { %v243_v16 = vmul.f32 %v381_v12, %v242_v14 }
 0x194   : > { %v244_v18 = vadd.f32 %v381_v12, %v243_v16 }
 0x196   : > { %v248_v20 = vsel %vm247_vm3, %v381_v12, %v244_v18 }
 0x197   : > { %v253_v21 = vsel %vm250_vm4, %v252_v19, %v248_v20 }
 0x198   : > { %v254_v22 = vmul.f32 %v379_v8, %v253_v21 }
 0x19a   : > { %367 = vmatmul.msk.f32.vlgmr.msra.gmra.mxu1 %vm203_vm0, %v254_v22 }
 0x217   : > { %v275_v23 = vpop.f32.mrf.mxu1 }
 0x218   : > { %278 = vst.msk [vmem:[%s199_s26] sm:$0xff] %vm203_vm0, %v275_v23 }
 0x219 PF: > { %s13_s12 = sadd.s32 1, %s388_s12  }
 0x21a   : > { %p10_p4 = scmp.ge.s32.totalorder %s13_s12, 10  }
 0x21c   :  { %12 = sbr.rel (!%p10_p4) target bundleno = 1 (0x1), region = 68 }

// kernel: transformer_encoder.14
= control target key start
LH: loop header
LB: loop body
LE: loop exit
PB: predicated region body
PF: predicated region fallthrough
CT: control target
= control target key end

     0   :  { %8 = vsyncpa [#allocation4], 0  ;;  %s135_s15 = smov [#allocation3]   ;;  %s136_s17 = smov 128   ;;  %s183_s0 = inlined_call_operand.vmem [shape: f32[16,32], index: 0, kind: input, shape index: {}]   ;;  %s184_s1 = inlined_call_operand.hbm [shape: f32[32,96], index: 1, kind: input, shape index: {}]   ;;  %s185_s2 = inlined_call_operand.vmem [shape: f32[1,96], index: 2, kind: input, shape index: {}]   ;;  %s186_s3 = inlined_call_operand.vmem [shape: f32[16,96], index: 3, kind: output, shape index: {}]  }
   0x1   :  { %s15_s14 = sshll.u32 %s184_s1, 4  ;;  %s17_s16 = sshll.u32 %s135_s15, 4  ;;  %s16_s14 = int_to_ptr.hbm [resolvable:$true] %s15_s14  ;;  %s18_s16 = int_to_ptr.vmem [resolvable:$true] %s17_s16 }
   0x2   :  { %s137_s18 = smov 8  }
   0x3   :  { %23 = dma.hbm_to_vmem [thread:$0]  %s16_s14, 512, %s18_s16, [#allocation4], %s136_s17, %s136_s17, %s137_s18  }
   0x4   :  { %133 = dma.done.wait [#allocation4], 512  }
   0x5   :  { %134 = vsyncadd [#allocation4], 4294966784  ;;  %vm34_vm0 = vcmask 785408   ;;  %v138_v0 = vmov 0.0   ;;  %v44_v1 = vld [vmem:[#allocation3 + $0x18] sm:$0xff]  ;;  %v43_v2 = vld [vmem:[#allocation3 + $0x10] sm:$0xff] }
   0x6   :  { %35 = vst.msk [vmem:[#allocation2] sm:$0xff] %vm34_vm0, %v138_v0  ;;  %64 = vmatpush.msra.mxu0 %v44_v1  ;;  %100 = vmatpush.msra.mxu1 %v44_v1  ;;  %v42_v3 = vld [vmem:[#allocation3 + $0x8] sm:$0xff]  ;;  %v41_v4 = vld [vmem:[#allocation3] sm:$0xff]  ;;  %v39_v5 = vld [vmem:[%s183_s0] sm:$0xff]  ;;  %vm45_vm1 = vcmask 261120  }
   0x7   :  { %36 = vst.msk [vmem:[#allocation2 + $0x8] sm:$0xff] %vm34_vm0, %v138_v0  ;;  %v40_v6 = vld [vmem:[%s183_s0 + $0x8] sm:$0xff]  ;;  %v108_v13 = vld [vmem:[%s185_s2] ss:$0 sm:$0xff] }
   0x8   :  { %65 = vmatpush.msra.mxu0 %v43_v2  ;;  %101 = vmatpush.msra.mxu1 %v43_v2 }
   0xa   :  { %66 = vmatpush.msra.mxu0 %v42_v3  ;;  %102 = vmatpush.msra.mxu1 %v42_v3 }
   0xc   :  { %67 = vmatpush.msra.mxu0 %v41_v4  ;;  %103 = vmatpush.msra.mxu1 %v41_v4 }
   0xd   :  { %98 = vmatmul.msk.f32.vlgmr.msra.gmra.mxu0 %vm45_vm1, %v39_v5  ;;  %99 = vmatmul.msk.f32.vlgmr.msra.gmra.mxu1 %vm45_vm1, %v40_v6  ;;  %v37_v7 = vld [vmem:[#allocation2] sm:$0xff] }
   0xe   :  { %v38_v8 = vld [vmem:[#allocation2 + $0x8] sm:$0xff] }
  0x8a   :  { %v69_v9 = vpop.f32.mrf.mxu0  ;;  %v72_v10 = vpop.f32.mrf.mxu1 }
  0x8b   :  { %v75_v11 = vadd.f32 %v69_v9, %v37_v7  ;;  %v76_v12 = vadd.f32 %v72_v10, %v38_v8 }
  0x8d   :  { %78 = vst.msk [vmem:[#allocation2] sm:$0xff] %vm34_vm0, %v75_v11 }
  0x8e   :  { %79 = vst.msk [vmem:[#allocation2 + $0x8] sm:$0xff] %vm34_vm0, %v76_v12 }
  0x94   :  { %v83_v14 = vld [vmem:[#allocation2] sm:$0xff] }
  0x95   :  { %v89_v15 = vadd.f32 %v108_v13, %v83_v14  ;;  %v84_v16 = vld [vmem:[#allocation2 + $0x8] sm:$0xff] }
  0x96   :  { %v90_v17 = vadd.f32 %v108_v13, %v84_v16 }
  0x97   :  { %91 = vst.msk [vmem:[%s186_s3] sm:$0xff] %vm34_vm0, %v89_v15 }
  0x98   :  { %92 = vst.msk [vmem:[%s186_s3 + $0x8] sm:$0xff] %vm34_vm0, %v90_v17 }
  0x99   :  { %97 = vsyncpa [#allocation4], 1 }

// kernel: transformer_encoder.16
= control target key start
LH: loop header
LB: loop body
LE: loop exit
PB: predicated region body
PF: predicated region fallthrough
CT: control target
= control target key end

     0   :  { %vm18_vm0 = vcmask 261120   ;;  %v88_v2 = vmov 0.0   ;;  %s144_s1 = inlined_call_operand.vmem [shape: f32[32,32], index: 1, kind: input, shape index: {}]   ;;  %s145_s2 = inlined_call_operand.vmem [shape: f32[1,32], index: 2, kind: input, shape index: {}]   ;;  %s146_s0 = inlined_call_operand.vmem [shape: f32[16,32], index: 0, kind: input, shape index: {}]   ;;  %s147_s3 = inlined_call_operand.vmem [shape: f32[16,32], index: 3, kind: output, shape index: {}]  }
   0x1   :  { %v28_v0 = vld [vmem:[%s144_s1 + $0x18] sm:$0xff]  ;;  %v27_v1 = vld [vmem:[%s144_s1 + $0x10] sm:$0xff]  ;;  %19 = vst.msk [vmem:[#allocation2] sm:$0xff] %vm18_vm0, %v88_v2  ;;  %v26_v3 = vld [vmem:[%s144_s1 + $0x8] sm:$0xff] }
   0x2   :  { %48 = vmatpush.msra.mxu0 %v28_v0  ;;  %82 = vmatpush.msra.mxu1 %v28_v0  ;;  %20 = vst.msk [vmem:[#allocation2 + $0x8] sm:$0xff] %vm18_vm0, %v88_v2  ;;  %v25_v4 = vld [vmem:[%s144_s1] sm:$0xff]  ;;  %v24_v6 = vld [vmem:[%s146_s0 + $0x8] sm:$0xff] }
   0x3   :  { %v23_v5 = vld [vmem:[%s146_s0] sm:$0xff] }
   0x4   :  { %49 = vmatpush.msra.mxu0 %v27_v1  ;;  %83 = vmatpush.msra.mxu1 %v27_v1  ;;  %v87_v13 = vld [vmem:[%s145_s2] ss:$0 sm:$0xff] }
   0x6   :  { %50 = vmatpush.msra.mxu0 %v26_v3  ;;  %84 = vmatpush.msra.mxu1 %v26_v3 }
   0x8   :  { %51 = vmatpush.msra.mxu0 %v25_v4  ;;  %85 = vmatpush.msra.mxu1 %v25_v4  ;;  %v21_v7 = vld [vmem:[#allocation2] sm:$0xff] }
   0x9   :  { %80 = vmatmul.msk.f32.vlgmr.msra.gmra.mxu0 %vm18_vm0, %v23_v5  ;;  %81 = vmatmul.msk.f32.vlgmr.msra.gmra.mxu1 %vm18_vm0, %v24_v6  ;;  %v22_v8 = vld [vmem:[#allocation2 + $0x8] sm:$0xff] }
  0x86   :  { %v53_v9 = vpop.f32.mrf.mxu0  ;;  %v56_v10 = vpop.f32.mrf.mxu1 }
  0x87   :  { %v59_v11 = vadd.f32 %v53_v9, %v21_v7  ;;  %v60_v12 = vadd.f32 %v56_v10, %v22_v8 }
  0x89   :  { %61 = vst.msk [vmem:[#allocation2] sm:$0xff] %vm18_vm0, %v59_v11 }
  0x8a   :  { %62 = vst.msk [vmem:[#allocation2 + $0x8] sm:$0xff] %vm18_vm0, %v60_v12 }
  0x90   :  { %v66_v14 = vld [vmem:[#allocation2] sm:$0xff] }
  0x91   :  { %v72_v15 = vadd.f32 %v87_v13, %v66_v14  ;;  %v67_v16 = vld [vmem:[#allocation2 + $0x8] sm:$0xff] }
  0x92   :  { %v73_v17 = vadd.f32 %v87_v13, %v67_v16 }
  0x93   :  { %74 = vst.msk [vmem:[%s147_s3] sm:$0xff] %vm18_vm0, %v72_v15 }
  0x94   :  { %75 = vst.msk [vmem:[%s147_s3 + $0x8] sm:$0xff] %vm18_vm0, %v73_v17 }

// kernel: transformer_encoder.17
= control target key start
LH: loop header
LB: loop body
LE: loop exit
PB: predicated region body
PF: predicated region fallthrough
CT: control target
= control target key end

     0   :  { %vm23_vm0 = vcmask 261120   ;;  %v102_v8 = vmov 32.0   ;;  %s158_s0 = inlined_call_operand.vmem [shape: f32[16,32], index: 0, kind: input, shape index: {}]   ;;  %s159_s1 = inlined_call_operand.vmem [shape: f32[16,32], index: 1, kind: input, shape index: {}]   ;;  %s160_s2 = inlined_call_operand.vmem [shape: f32[1,32], index: 2, kind: input, shape index: {}]   ;;  %s161_s3 = inlined_call_operand.vmem [shape: f32[1,32], index: 3, kind: input, shape index: {}]   ;;  %s162_s4 = inlined_call_operand.vmem [shape: f32[16,32], index: 4, kind: output, shape index: {}]  }
   0x1   :  { %v17_v0 = vld [vmem:[%s158_s0] sm:$0xff]  ;;  %v18_v3 = vld [vmem:[%s158_s0 + $0x8] sm:$0xff]  ;;  %96 = vrcp.f32 %v102_v8 }
   0x2   :  { %v19_v1 = vld [vmem:[%s159_s1] sm:$0xff]  ;;  %v20_v4 = vld [vmem:[%s159_s1 + $0x8] sm:$0xff] }
   0x3   :  { %v21_v2 = vadd.f32 %v19_v1, %v17_v0  ;;  %v22_v6 = vadd.f32 %v20_v4, %v18_v3  ;;  %v94_v39 = vld [vmem:[%s160_s2] ss:$0 sm:$0xff] }
   0x4   :  { %v95_v42 = vld [vmem:[%s161_s3] ss:$0 sm:$0xff] }
   0x5   :  { %v24_v5 = vsel %vm23_vm0, %v21_v2, 0.0  ;;  %v27_v7 = vsel %vm23_vm0, %v22_v6, 0.0 }
   0x6   :  { %25 = vadd.xlane.f32.xlu0 %v24_v5 }
   0x7   :  { %v97_v9 = vpop.eup %96 }
   0x8   :  { %v31_v10 = vmul.f32 32.0, %v97_v9  ;;  %vm35_vm1 = vweird.f32 %v97_v9 }
   0xa   :  { %v32_v11 = vsub.f32 1.0, %v31_v10 }
   0xc   :  { %v33_v12 = vmul.f32 %v97_v9, %v32_v11 }
   0xe   :  { %28 = vadd.xlane.f32.xlu0 %v27_v7  ;;  %v34_v13 = vadd.f32 %v97_v9, %v33_v12 }
  0x10   :  { %v36_v14 = vsel %vm35_vm1, %v97_v9, %v34_v13 }
  0x79   :  { %v26_v15 = vpop.xlane.xlu0 %25 }
  0x7a   :  { %v37_v16 = vmul.f32 %v36_v14, %v26_v15 }
  0x7c   :  { %v39_v17 = vsub.f32 %v21_v2, %v37_v16 }
  0x7e   :  { %v41_v18 = vmul.f32 %v39_v17, %v39_v17 }
  0x80   :  { %v43_v19 = vsel %vm23_vm0, %v41_v18, 0.0 }
  0x81   :  { %44 = vadd.xlane.f32.xlu1 %v43_v19  ;;  %v29_v20 = vpop.xlane.xlu0 %28 }
  0x82   :  { %v38_v21 = vmul.f32 %v36_v14, %v29_v20 }
  0x84   :  { %v40_v22 = vsub.f32 %v22_v6, %v38_v21 }
  0x86   :  { %v42_v23 = vmul.f32 %v40_v22, %v40_v22 }
  0x88   :  { %v46_v24 = vsel %vm23_vm0, %v42_v23, 0.0 }
  0x89   :  { %47 = vadd.xlane.f32.xlu1 %v46_v24 }
  0xf4   :  { %v45_v25 = vpop.xlane.xlu1 %44 }
  0xf5   :  { %v49_v26 = vmul.f32 %v45_v25, %v36_v14 }
  0xf7   :  { %v51_v27 = vadd.f32 1e-05, %v49_v26 }
  0xf9   :  { %98 = vrsqrt.f32 %v51_v27  ;;  %vm59_vm3 = vweird.f32 %v51_v27 }
  0xfc   :  { %v48_v28 = vpop.xlane.xlu1 %47 }
  0xfd   :  { %v50_v29 = vmul.f32 %v48_v28, %v36_v14 }
  0xff   :  { %v99_v30 = vpop.eup %98  ;;  %v52_v31 = vadd.f32 1e-05, %v50_v29 }
 0x100   :  { %v54_v32 = vmul.f32 %v99_v30, %v51_v27  ;;  %vm60_vm2 = vweird.f32 %v99_v30 }
 0x101   :  { %100 = vrsqrt.f32 %v52_v31  ;;  %vm61_vm4 = vmor %vm59_vm3, %vm60_vm2  ;;  %vm69_vm6 = vweird.f32 %v52_v31 }
 0x102   :  { %v55_v33 = vmul.f32 %v99_v30, %v54_v32 }
 0x104   :  { %v56_v34 = vmul.f32 0.5, %v55_v33 }
 0x106   :  { %v57_v35 = vsub.f32 1.5, %v56_v34 }
 0x107   :  { %v101_v36 = vpop.eup %100 }
 0x108   :  { %v58_v37 = vmul.f32 %v99_v30, %v57_v35  ;;  %v64_v38 = vmul.f32 %v101_v36, %v52_v31  ;;  %vm70_vm5 = vweird.f32 %v101_v36 }
 0x109   :  { %vm71_vm7 = vmor %vm69_vm6, %vm70_vm5 }
 0x10a   :  { %v62_v40 = vsel %vm61_vm4, %v99_v30, %v58_v37  ;;  %v65_v41 = vmul.f32 %v101_v36, %v64_v38 }
 0x10b   :  { %v73_v43 = vmul.f32 %v62_v40, %v39_v17 }
 0x10c   :  { %v66_v44 = vmul.f32 0.5, %v65_v41 }
 0x10d   :  { %v79_v45 = vmul.f32 %v94_v39, %v73_v43 }
 0x10e   :  { %v67_v46 = vsub.f32 1.5, %v66_v44 }
 0x10f   :  { %v85_v47 = vadd.f32 %v95_v42, %v79_v45 }
 0x110   :  { %v68_v48 = vmul.f32 %v101_v36, %v67_v46 }
 0x111   :  { %87 = vst.msk [vmem:[%s162_s4] sm:$0xff] %vm23_vm0, %v85_v47 }
 0x112   :  { %v72_v49 = vsel %vm71_vm7, %v101_v36, %v68_v48 }
 0x113   :  { %v74_v50 = vmul.f32 %v72_v49, %v40_v22 }
 0x115   :  { %v80_v51 = vmul.f32 %v94_v39, %v74_v50 }
 0x117   :  { %v86_v52 = vadd.f32 %v95_v42, %v80_v51 }
 0x119   :  { %88 = vst.msk [vmem:[%s162_s4 + $0x8] sm:$0xff] %vm23_vm0, %v86_v52 }

// kernel: transformer_encoder.19
= control target key start
LH: loop header
LB: loop body
LE: loop exit
PB: predicated region body
PF: predicated region fallthrough
CT: control target
= control target key end

     0   :  { %vm18_vm0 = vcmask 261120   ;;  %v97_v2 = vmov 0.0   ;;  %vm33_vm1 = vcmask 523264   ;;  %s163_s1 = inlined_call_operand.vmem [shape: f32[64,32], index: 1, kind: input, shape index: {}]   ;;  %s164_s2 = inlined_call_operand.vmem [shape: f32[1,32], index: 2, kind: input, shape index: {}]   ;;  %s165_s0 = inlined_call_operand.vmem [shape: f32[16,64], index: 0, kind: input, shape index: {}]   ;;  %s166_s3 = inlined_call_operand.vmem [shape: f32[16,32], index: 3, kind: output, shape index: {}]  }
   0x1   :  { %v32_v0 = vld [vmem:[%s163_s1 + $0x38] sm:$0xff]  ;;  %v31_v1 = vld [vmem:[%s163_s1 + $0x30] sm:$0xff]  ;;  %19 = vst.msk [vmem:[#allocation2] sm:$0xff] %vm18_vm0, %v97_v2  ;;  %v30_v3 = vld [vmem:[%s163_s1 + $0x28] sm:$0xff] }
   0x2   :  { %48 = vmatpush.msra.mxu0 %v32_v0  ;;  %87 = vmatpush.msra.mxu1 %v32_v0  ;;  %20 = vst.msk [vmem:[#allocation2 + $0x8] sm:$0xff] %vm18_vm0, %v97_v2  ;;  %v29_v4 = vld [vmem:[%s163_s1 + $0x20] sm:$0xff]  ;;  %v28_v5 = vld [vmem:[%s163_s1 + $0x18] sm:$0xff]  ;;  %v27_v6 = vld [vmem:[%s163_s1 + $0x10] sm:$0xff] }
   0x3   :  { %v26_v7 = vld [vmem:[%s163_s1 + $0x8] sm:$0xff]  ;;  %v25_v8 = vld [vmem:[%s163_s1] sm:$0xff] }
   0x4   :  { %49 = vmatpush.msra.mxu0 %v31_v1  ;;  %88 = vmatpush.msra.mxu1 %v31_v1  ;;  %v23_v9 = vld [vmem:[%s165_s0] sm:$0xff]  ;;  %v24_v10 = vld [vmem:[%s165_s0 + $0x8] sm:$0xff] }
   0x5   :  { %v96_v17 = vld [vmem:[%s164_s2] ss:$0 sm:$0xff] }
   0x6   :  { %50 = vmatpush.msra.mxu0 %v30_v3  ;;  %89 = vmatpush.msra.mxu1 %v30_v3 }
   0x8   :  { %51 = vmatpush.msra.mxu0 %v29_v4  ;;  %90 = vmatpush.msra.mxu1 %v29_v4  ;;  %v21_v11 = vld [vmem:[#allocation2] sm:$0xff] }
   0x9   :  { %v22_v12 = vld [vmem:[#allocation2 + $0x8] sm:$0xff] }
   0xa   :  { %52 = vmatpush.msra.mxu0 %v28_v5  ;;  %91 = vmatpush.msra.mxu1 %v28_v5 }
   0xc   :  { %53 = vmatpush.msra.mxu0 %v27_v6  ;;  %92 = vmatpush.msra.mxu1 %v27_v6 }
   0xe   :  { %54 = vmatpush.msra.mxu0 %v26_v7  ;;  %93 = vmatpush.msra.mxu1 %v26_v7 }
  0x10   :  { %55 = vmatpush.msra.mxu0 %v25_v8  ;;  %94 = vmatpush.msra.mxu1 %v25_v8 }
  0x11   :  { %85 = vmatmul.msk.f32.vlgmr.msra.gmra.mxu0 %vm33_vm1, %v23_v9  ;;  %86 = vmatmul.msk.f32.vlgmr.msra.gmra.mxu1 %vm33_vm1, %v24_v10 }
  0x8e   :  { %v57_v13 = vpop.f32.mrf.mxu0  ;;  %v60_v14 = vpop.f32.mrf.mxu1 }
  0x8f   :  { %v63_v15 = vadd.f32 %v57_v13, %v21_v11  ;;  %v64_v16 = vadd.f32 %v60_v14, %v22_v12 }
  0x91   :  { %66 = vst.msk [vmem:[#allocation2] sm:$0xff] %vm18_vm0, %v63_v15 }
  0x92   :  { %67 = vst.msk [vmem:[#allocation2 + $0x8] sm:$0xff] %vm18_vm0, %v64_v16 }
  0x98   :  { %v71_v18 = vld [vmem:[#allocation2] sm:$0xff] }
  0x99   :  { %v77_v19 = vadd.f32 %v96_v17, %v71_v18  ;;  %v72_v20 = vld [vmem:[#allocation2 + $0x8] sm:$0xff] }
  0x9a   :  { %v78_v21 = vadd.f32 %v96_v17, %v72_v20 }
  0x9b   :  { %79 = vst.msk [vmem:[%s166_s3] sm:$0xff] %vm18_vm0, %v77_v19 }
  0x9c   :  { %80 = vst.msk [vmem:[%s166_s3 + $0x8] sm:$0xff] %vm18_vm0, %v78_v21 }

// kernel: transformer_encoder.27
= control target key start
LH: loop header
LB: loop body
LE: loop exit
PB: predicated region body
PF: predicated region fallthrough
CT: control target
= control target key end

     0   :  { %vm24_vm0 = vcmask 261120   ;;  %s202_s0 = inlined_call_operand.vmem [shape: f32[16,32], index: 0, kind: input, shape index: {}]   ;;  %s203_s1 = inlined_call_operand.vmem [shape: f32[16,32], index: 1, kind: input, shape index: {}]   ;;  %s204_s2 = inlined_call_operand.vmem [shape: f32[1,32], index: 2, kind: input, shape index: {}]   ;;  %s205_s3 = inlined_call_operand.vmem [shape: f32[1,32], index: 3, kind: input, shape index: {}]   ;;  %s206_s4 = inlined_call_operand.hbm [shape: f32[16,32], index: 4, kind: output, shape index: {}]  }
   0x1   :  { %v18_v0 = vld [vmem:[%s202_s0] sm:$0xff] }
   0x2   :  { %v20_v1 = vld [vmem:[%s203_s1] sm:$0xff] }
   0x3   :  { %v22_v2 = vadd.f32 %v20_v1, %v18_v0 }
   0x4   :  { %9 = vsyncpa [#allocation3], 0  ;;  %v19_v3 = vld [vmem:[%s202_s0 + $0x8] sm:$0xff]  ;;  %v146_v8 = vmov 32.0   ;;  %v112_v39 = vld [vmem:[%s204_s2] ss:$0 sm:$0xff] }
   0x5   :  { %v21_v4 = vld [vmem:[%s203_s1 + $0x8] sm:$0xff]  ;;  %v25_v5 = vsel %vm24_vm0, %v22_v2, 0.0  ;;  %114 = vrcp.f32 %v146_v8  ;;  %v113_v43 = vld [vmem:[%s205_s3] ss:$0 sm:$0xff]  ;;  %s147_s2 = smov [#allocation2]   ;;  %s96_s28 = sshll.u32 %s206_s4, 4  ;;  %s97_s28 = int_to_ptr.hbm [resolvable:$true] %s96_s28 }
   0x6   :  { %26 = vadd.xlane.f32.xlu0 %v25_v5  ;;  %v23_v6 = vadd.f32 %v21_v4, %v19_v3  ;;  %s94_s25 = sshll.u32 %s147_s2, 4  ;;  %s148_s3 = smov 128   ;;  %s95_s25 = int_to_ptr.vmem [resolvable:$true] %s94_s25 }
   0x7   :  { %s149_s29 = smov 8  }
   0x8   :  { %v28_v7 = vsel %vm24_vm0, %v23_v6, 0.0 }
   0xb   :  { %v115_v9 = vpop.eup %114 }
   0xc   :  { %v32_v10 = vmul.f32 32.0, %v115_v9  ;;  %vm36_vm1 = vweird.f32 %v115_v9 }
   0xe   :  { %29 = vadd.xlane.f32.xlu0 %v28_v7  ;;  %v33_v11 = vsub.f32 1.0, %v32_v10 }
  0x10   :  { %v34_v12 = vmul.f32 %v115_v9, %v33_v11 }
  0x12   :  { %v35_v13 = vadd.f32 %v115_v9, %v34_v12 }
  0x14   :  { %v37_v14 = vsel %vm36_vm1, %v115_v9, %v35_v13 }
  0x79   :  { %v27_v15 = vpop.xlane.xlu0 %26 }
  0x7a   :  { %v38_v16 = vmul.f32 %v37_v14, %v27_v15 }
  0x7c   :  { %v40_v17 = vsub.f32 %v22_v2, %v38_v16 }
  0x7e   :  { %v42_v18 = vmul.f32 %v40_v17, %v40_v17 }
  0x80   :  { %v44_v19 = vsel %vm24_vm0, %v42_v18, 0.0 }
  0x81   :  { %45 = vadd.xlane.f32.xlu1 %v44_v19  ;;  %v30_v20 = vpop.xlane.xlu0 %29 }
  0x82   :  { %v39_v21 = vmul.f32 %v37_v14, %v30_v20 }
  0x84   :  { %v41_v22 = vsub.f32 %v23_v6, %v39_v21 }
  0x86   :  { %v43_v23 = vmul.f32 %v41_v22, %v41_v22 }
  0x88   :  { %v47_v24 = vsel %vm24_vm0, %v43_v23, 0.0 }
  0x89   :  { %48 = vadd.xlane.f32.xlu1 %v47_v24 }
  0xf4   :  { %v46_v25 = vpop.xlane.xlu1 %45 }
  0xf5   :  { %v50_v26 = vmul.f32 %v46_v25, %v37_v14 }
  0xf7   :  { %v52_v27 = vadd.f32 1e-05, %v50_v26 }
  0xf9   :  { %116 = vrsqrt.f32 %v52_v27  ;;  %vm60_vm3 = vweird.f32 %v52_v27 }
  0xfc   :  { %v49_v28 = vpop.xlane.xlu1 %48 }
  0xfd   :  { %v51_v29 = vmul.f32 %v49_v28, %v37_v14 }
  0xff   :  { %v117_v30 = vpop.eup %116  ;;  %v53_v31 = vadd.f32 1e-05, %v51_v29 }
 0x100   :  { %v55_v32 = vmul.f32 %v117_v30, %v52_v27  ;;  %vm61_vm2 = vweird.f32 %v117_v30 }
 0x101   :  { %118 = vrsqrt.f32 %v53_v31  ;;  %vm62_vm4 = vmor %vm60_vm3, %vm61_vm2  ;;  %vm70_vm6 = vweird.f32 %v53_v31 }
 0x102   :  { %v56_v33 = vmul.f32 %v117_v30, %v55_v32 }
 0x104   :  { %v57_v34 = vmul.f32 0.5, %v56_v33 }
 0x106   :  { %v58_v35 = vsub.f32 1.5, %v57_v34 }
 0x107   :  { %v119_v36 = vpop.eup %118 }
 0x108   :  { %v59_v37 = vmul.f32 %v117_v30, %v58_v35  ;;  %v65_v38 = vmul.f32 %v119_v36, %v53_v31  ;;  %vm71_vm5 = vweird.f32 %v119_v36 }
 0x109   :  { %vm72_vm7 = vmor %vm70_vm6, %vm71_vm5 }
 0x10a   :  { %v63_v40 = vsel %vm62_vm4, %v117_v30, %v59_v37  ;;  %v66_v41 = vmul.f32 %v119_v36, %v65_v38 }
 0x10b   :  { %v74_v42 = vmul.f32 %v63_v40, %v40_v17 }
 0x10c   :  { %v67_v44 = vmul.f32 0.5, %v66_v41 }
 0x10d   :  { %v80_v45 = vmul.f32 %v112_v39, %v74_v42 }
 0x10e   :  { %v68_v46 = vsub.f32 1.5, %v67_v44 }
 0x10f   :  { %v86_v47 = vadd.f32 %v113_v43, %v80_v45 }
 0x110   :  { %v69_v48 = vmul.f32 %v119_v36, %v68_v46 }
 0x111   :  { %88 = vst.msk [vmem:[#allocation2] sm:$0xff] %vm24_vm0, %v86_v47 }
 0x112   :  { %v73_v49 = vsel %vm72_vm7, %v119_v36, %v69_v48 }
 0x113   :  { %v75_v50 = vmul.f32 %v73_v49, %v41_v22 }
 0x115   :  { %v81_v51 = vmul.f32 %v112_v39, %v75_v50 }
 0x117   :  { %v87_v52 = vadd.f32 %v113_v43, %v81_v51 }
 0x119   :  { %89 = vst.msk [vmem:[#allocation2 + $0x8] sm:$0xff] %vm24_vm0, %v87_v52 }
 0x11a   :  { %102 = dma.vmem_to_hbm [thread:$0]  %s95_s25, 256, %s97_s28, [#allocation3], %s148_s3, %s148_s3, %s149_s29  }
 0x11b   :  { %144 = dma.done.wait [#allocation3], 256  }
 0x11c   :  { %145 = vsyncadd [#allocation3], 4294967040 }
 0x11d   :  { %107 = vsyncpa [#allocation3], 1 }

// kernel: transformer_encoder.21
= control target key start
LH: loop header
LB: loop body
LE: loop exit
PB: predicated region body
PF: predicated region fallthrough
CT: control target
= control target key end

     0   :  { %vm18_vm0 = vcmask 785408   ;;  %v89_v2 = vmov 0.0   ;;  %vm29_vm1 = vcmask 261120   ;;  %s143_s1 = inlined_call_operand.vmem [shape: f32[32,96], index: 1, kind: input, shape index: {}]   ;;  %s144_s2 = inlined_call_operand.vmem [shape: f32[1,96], index: 2, kind: input, shape index: {}]   ;;  %s145_s0 = inlined_call_operand.vmem [shape: f32[16,32], index: 0, kind: input, shape index: {}]   ;;  %s146_s3 = inlined_call_operand.vmem [shape: f32[16,96], index: 3, kind: output, shape index: {}]  }
   0x1   :  { %v28_v0 = vld [vmem:[%s143_s1 + $0x18] sm:$0xff]  ;;  %v27_v1 = vld [vmem:[%s143_s1 + $0x10] sm:$0xff]  ;;  %19 = vst.msk [vmem:[#allocation2] sm:$0xff] %vm18_vm0, %v89_v2  ;;  %v26_v3 = vld [vmem:[%s143_s1 + $0x8] sm:$0xff] }
   0x2   :  { %48 = vmatpush.msra.mxu0 %v28_v0  ;;  %83 = vmatpush.msra.mxu1 %v28_v0  ;;  %20 = vst.msk [vmem:[#allocation2 + $0x8] sm:$0xff] %vm18_vm0, %v89_v2  ;;  %v25_v4 = vld [vmem:[%s143_s1] sm:$0xff]  ;;  %v24_v6 = vld [vmem:[%s145_s0 + $0x8] sm:$0xff] }
   0x3   :  { %v23_v5 = vld [vmem:[%s145_s0] sm:$0xff] }
   0x4   :  { %49 = vmatpush.msra.mxu0 %v27_v1  ;;  %84 = vmatpush.msra.mxu1 %v27_v1  ;;  %v88_v13 = vld [vmem:[%s144_s2] ss:$0 sm:$0xff] }
   0x6   :  { %50 = vmatpush.msra.mxu0 %v26_v3  ;;  %85 = vmatpush.msra.mxu1 %v26_v3 }
   0x8   :  { %51 = vmatpush.msra.mxu0 %v25_v4  ;;  %86 = vmatpush.msra.mxu1 %v25_v4  ;;  %v21_v7 = vld [vmem:[#allocation2] sm:$0xff] }
   0x9   :  { %81 = vmatmul.msk.f32.vlgmr.msra.gmra.mxu0 %vm29_vm1, %v23_v5  ;;  %82 = vmatmul.msk.f32.vlgmr.msra.gmra.mxu1 %vm29_vm1, %v24_v6  ;;  %v22_v8 = vld [vmem:[#allocation2 + $0x8] sm:$0xff] }
  0x86   :  { %v53_v9 = vpop.f32.mrf.mxu0  ;;  %v56_v10 = vpop.f32.mrf.mxu1 }
  0x87   :  { %v59_v11 = vadd.f32 %v53_v9, %v21_v7  ;;  %v60_v12 = vadd.f32 %v56_v10, %v22_v8 }
  0x89   :  { %62 = vst.msk [vmem:[#allocation2] sm:$0xff] %vm18_vm0, %v59_v11 }
  0x8a   :  { %63 = vst.msk [vmem:[#allocation2 + $0x8] sm:$0xff] %vm18_vm0, %v60_v12 }
  0x90   :  { %v67_v14 = vld [vmem:[#allocation2] sm:$0xff] }
  0x91   :  { %v73_v15 = vadd.f32 %v88_v13, %v67_v14  ;;  %v68_v16 = vld [vmem:[#allocation2 + $0x8] sm:$0xff] }
  0x92   :  { %v74_v17 = vadd.f32 %v88_v13, %v68_v16 }
  0x93   :  { %75 = vst.msk [vmem:[%s146_s3] sm:$0xff] %vm18_vm0, %v73_v15 }
  0x94   :  { %76 = vst.msk [vmem:[%s146_s3 + $0x8] sm:$0xff] %vm18_vm0, %v74_v17 }

// kernel: transformer_encoder.18
= control target key start
LH: loop header
LB: loop body
LE: loop exit
PB: predicated region body
PF: predicated region fallthrough
CT: control target
= control target key end

     0   :  { %vm18_vm0 = vcmask 523264   ;;  %v91_v2 = vmov 0.0   ;;  %vm29_vm1 = vcmask 261120   ;;  %s145_s1 = inlined_call_operand.vmem [shape: f32[32,64], index: 1, kind: input, shape index: {}]   ;;  %s146_s2 = inlined_call_operand.vmem [shape: f32[1,64], index: 2, kind: input, shape index: {}]   ;;  %s147_s0 = inlined_call_operand.vmem [shape: f32[16,32], index: 0, kind: input, shape index: {}]   ;;  %s148_s3 = inlined_call_operand.vmem [shape: f32[16,64], index: 3, kind: output, shape index: {}]  }
   0x1   :  { %v28_v0 = vld [vmem:[%s145_s1 + $0x18] sm:$0xff]  ;;  %v27_v1 = vld [vmem:[%s145_s1 + $0x10] sm:$0xff]  ;;  %19 = vst.msk [vmem:[#allocation2] sm:$0xff] %vm18_vm0, %v91_v2  ;;  %v26_v3 = vld [vmem:[%s145_s1 + $0x8] sm:$0xff] }
   0x2   :  { %48 = vmatpush.msra.mxu0 %v28_v0  ;;  %85 = vmatpush.msra.mxu1 %v28_v0  ;;  %20 = vst.msk [vmem:[#allocation2 + $0x8] sm:$0xff] %vm18_vm0, %v91_v2  ;;  %v25_v4 = vld [vmem:[%s145_s1] sm:$0xff]  ;;  %v24_v6 = vld [vmem:[%s147_s0 + $0x8] sm:$0xff] }
   0x3   :  { %v23_v5 = vld [vmem:[%s147_s0] sm:$0xff] }
   0x4   :  { %49 = vmatpush.msra.mxu0 %v27_v1  ;;  %86 = vmatpush.msra.mxu1 %v27_v1  ;;  %v90_v13 = vld [vmem:[%s146_s2] ss:$0 sm:$0xff] }
   0x6   :  { %50 = vmatpush.msra.mxu0 %v26_v3  ;;  %87 = vmatpush.msra.mxu1 %v26_v3 }
   0x8   :  { %51 = vmatpush.msra.mxu0 %v25_v4  ;;  %88 = vmatpush.msra.mxu1 %v25_v4  ;;  %v21_v7 = vld [vmem:[#allocation2] sm:$0xff] }
   0x9   :  { %83 = vmatmul.msk.f32.vlgmr.msra.gmra.mxu0 %vm29_vm1, %v23_v5  ;;  %84 = vmatmul.msk.f32.vlgmr.msra.gmra.mxu1 %vm29_vm1, %v24_v6  ;;  %v22_v8 = vld [vmem:[#allocation2 + $0x8] sm:$0xff] }
  0x86   :  { %v53_v9 = vpop.f32.mrf.mxu0  ;;  %v56_v10 = vpop.f32.mrf.mxu1 }
  0x87   :  { %v59_v11 = vadd.f32 %v53_v9, %v21_v7  ;;  %v60_v12 = vadd.f32 %v56_v10, %v22_v8 }
  0x89   :  { %62 = vst.msk [vmem:[#allocation2] sm:$0xff] %vm18_vm0, %v59_v11 }
  0x8a   :  { %63 = vst.msk [vmem:[#allocation2 + $0x8] sm:$0xff] %vm18_vm0, %v60_v12 }
  0x90   :  { %v67_v14 = vld [vmem:[#allocation2] sm:$0xff] }
  0x91   :  { %v73_v15 = vadd.f32 %v90_v13, %v67_v14  ;;  %v68_v16 = vld [vmem:[#allocation2 + $0x8] sm:$0xff] }
  0x92   :  { %v74_v17 = vadd.f32 %v90_v13, %v68_v16 }
  0x93   :  { %v75_v18 = vmax.f32 %v73_v15, 0.0 }
  0x94   :  { %v76_v19 = vmax.f32 %v74_v17, 0.0 }
  0x95   :  { %77 = vst.msk [vmem:[%s148_s3] sm:$0xff] %vm18_vm0, %v75_v18 }
  0x96   :  { %78 = vst.msk [vmem:[%s148_s3 + $0x8] sm:$0xff] %vm18_vm0, %v76_v19 }

</bundles_post_ra>
